<compile_context>
chip_gen: v7x
topology: tpu7x:2x2x1
jax: 0.10.0
libtpu: 0.0.40
codegen_flags: <defaults>
</compile_context>

<pallas_src>
import jax
import jax.numpy as jnp
from jax import lax
from jax.experimental import pallas as pl
from jax.experimental.pallas import tpu as pltpu

EPS = 1e-8
PARALLEL_1D = pltpu.CompilerParams(dimension_semantics=("parallel",))


def _full_spec(*shape):
    """BlockSpec covering the whole array (weights shared across the batch grid)."""
    n = len(shape)
    return pl.BlockSpec(shape, lambda m: (0,) * n)


# ----------------------------------------------------------------------------
# Kernel 1: encoder (framing + conv + ReLU) + cLN + bottleneck 1x1, fused
# ----------------------------------------------------------------------------
def encoder_cln_bottleneck(enc_u, cln_gb, bottleneck_w, win_t, K):
    """enc_u: [N, L] bf16; cln_gb: [N, 2] f32 (gamma|beta); win_t: [M, hop, W]
    lane-dense strided waveform view. Returns mixture_w [M,N,K], score [M,B,K]."""
    M, hop, W = win_t.shape
    N, L = enc_u.shape
    Bn = bottleneck_w.shape[0]
    inv_n = 1.0 / float(N)

    def kernel(u_ref, gb_ref, bn_ref, win_ref, mw_ref, sc_ref):
        xw = win_ref[0].astype(jnp.bfloat16)                    # [hop, W]
        u = u_ref[...]                                          # [N, L] bf16
        # frame k = window k (low taps) ++ window k+1 (high taps)
        lo = jnp.dot(u[:, :hop], xw, preferred_element_type=jnp.float32)   # [N, W]
        hi = jnp.dot(u[:, hop:], xw, preferred_element_type=jnp.float32)   # [N, W]
        mw = jnp.maximum(lo[:, :K] + hi[:, 1:K + 1], 0.0)       # ReLU, [N, K]
        mw_ref[0] = mw
        # ChannelwiseLayerNorm over channels per time step (one-pass stats).
        mean = jnp.sum(mw, axis=0, keepdims=True) * inv_n                  # [1, K]
        var = jnp.sum(mw * mw, axis=0, keepdims=True) * inv_n - mean * mean
        gamma = gb_ref[:, 0:1]
        beta = gb_ref[:, 1:2]
        y = gamma * (mw - mean) * lax.rsqrt(var + EPS) + beta
        # bottleneck 1x1 conv N -> B (bf16 operands, f32 accumulate)
        sc_ref[0] = jnp.dot(bn_ref[...], y.astype(jnp.bfloat16),
                            preferred_element_type=jnp.float32)

    return pl.pallas_call(
        kernel,
        out_shape=(jax.ShapeDtypeStruct((M, N, K), jnp.float32),
                   jax.ShapeDtypeStruct((M, Bn, K), jnp.float32)),
        grid=(M,),
        in_specs=[
            _full_spec(N, L),
            _full_spec(N, 2),
            _full_spec(Bn, N),
            pl.BlockSpec((1, hop, W), lambda m: (m, 0, 0)),
        ],
        out_specs=(pl.BlockSpec((1, N, K), lambda m: (m, 0, 0)),
                   pl.BlockSpec((1, Bn, K), lambda m: (m, 0, 0))),
        compiler_params=PARALLEL_1D,
    )(enc_u, cln_gb, bottleneck_w, win_t)


# ----------------------------------------------------------------------------
# Kernel 2: ALL R*X TemporalBlocks fused into one kernel
# ----------------------------------------------------------------------------
def temporal_blocks(blk_w1, blk_pw, blk_pb, score, P, X, R):
    """Each block: 1x1 (B->H) -> PReLU -> gLN -> depthwise (dilated, 'same')
    -> PReLU -> gLN -> 1x1 (H->B) -> + residual.  All R*X blocks in one call.
    blk_pb packs per-channel params: [dw taps(P), g1, b1, g2, b2, a1, a2]."""
    M, Bn, K = score.shape
    RX, H, PP = blk_pb.shape
    assert RX == R * X
    halo = max((P - 1) * (2 ** x) // 2 for x in range(X))   # max dilation pad
    inv_hk = 1.0 / float(H * K)

    def kernel(w1_ref, pw_ref, pb_ref, x_ref, o_ref, halo_ref):
        # Zero the halo'd depthwise staging tile once; only its centre is
        # rewritten per block, so the halo columns stay zero ('same' padding).
        halo_ref[...] = jnp.zeros_like(halo_ref)

        def repeat_body(r, x):
            for xb in range(X):                     # static unroll inside one repeat
                i = r * X + xb
                d = 2 ** xb
                pad = (P - 1) * d // 2
                pb = pb_ref[i]                      # [H, P+6] f32 (dynamic row block)
                dw = pb[:, 0:P]
                g1 = pb[:, P:P + 1]
                b1 = pb[:, P + 1:P + 2]
                g2 = pb[:, P + 2:P + 3]
                b2 = pb[:, P + 3:P + 4]
                a1 = pb[:, P + 4:P + 5]
                a2 = pb[:, P + 5:P + 6]
                # 1x1 conv B -> H (MXU, bf16 operands / f32 accumulate)
                y = jnp.dot(w1_ref[i], x.astype(jnp.bfloat16),
                            preferred_element_type=jnp.float32)          # [H, K]
                # PReLU + gLN (one-pass stats, f32)
                y = jnp.where(y >= 0, y, a1 * y)
                mu = jnp.sum(y) * inv_hk
                var = jnp.sum(y * y) * inv_hk - mu * mu
                y = g1 * (y - mu) * lax.rsqrt(var + EPS) + b1
                # depthwise dilated conv, 'same' padding via halo'd VMEM tile:
                # each tap = static-offset slice read + VPU FMA (no MXU work).
                halo_ref[:, halo:halo + K] = y
                acc = dw[:, 0:1] * halo_ref[:, halo - pad:halo - pad + K]
                for t in range(1, P):
                    s = t * d - pad
                    acc = acc + dw[:, t:t + 1] * halo_ref[:, halo + s:halo + s + K]
                # PReLU + gLN
                z = jnp.where(acc >= 0, acc, a2 * acc)
                mu = jnp.sum(z) * inv_hk
                var = jnp.sum(z * z) * inv_hk - mu * mu
                z = g2 * (z - mu) * lax.rsqrt(var + EPS) + b2
                # 1x1 conv H -> B + residual
                x = x + jnp.dot(pw_ref[i], z.astype(jnp.bfloat16),
                                preferred_element_type=jnp.float32)
            return x

        o_ref[0] = lax.fori_loop(0, R, repeat_body, x_ref[0])

    return pl.pallas_call(
        kernel,
        out_shape=jax.ShapeDtypeStruct((M, Bn, K), jnp.float32),
        grid=(M,),
        in_specs=[
            _full_spec(RX, H, Bn),
            _full_spec(RX, Bn, H),
            _full_spec(RX, H, PP),
            pl.BlockSpec((1, Bn, K), lambda m: (m, 0, 0)),
        ],
        out_specs=pl.BlockSpec((1, Bn, K), lambda m: (m, 0, 0)),
        scratch_shapes=[pltpu.VMEM((H, K + 2 * halo), jnp.float32)],
        compiler_params=PARALLEL_1D,
    )(blk_w1, blk_pw, blk_pb, score)


# ----------------------------------------------------------------------------
# Kernel 3: mask 1x1 + ReLU mask + fused decoder matmul + overlap-and-add
# ----------------------------------------------------------------------------
def mask_decode_overlap_add(mask_w, dec_w, mixture_w, score, C):
    M, N, K = mixture_w.shape
    Bn = score.shape[1]
    L = dec_w.shape[0]
    hop = L // 2
    Kw = K + 1                                      # == T // hop (L == 2*hop)

    def kernel(mk_ref, dec_ref, mw_ref, sc_ref, o_ref):
        sc = sc_ref[0].astype(jnp.bfloat16)                               # [B, K]
        mask = jnp.maximum(jnp.dot(mk_ref[...], sc,
                                   preferred_element_type=jnp.float32), 0.0)  # [C*N, K]
        mw = mw_ref[0]                                                    # [N, K]
        # fuse all C sources into one decoder matmul: [L,N] x [N, C*K]
        sw = jnp.concatenate(
            [mw * mask[c * N:(c + 1) * N, :] for c in range(C)], axis=1)
        frames = jnp.dot(dec_ref[...], sw.astype(jnp.bfloat16),
                         preferred_element_type=jnp.float32)              # [L, C*K]
        zcol = jnp.zeros((hop, 1), jnp.float32)
        for c in range(C):                                                # static unroll
            fl = frames[:hop, c * K:(c + 1) * K]                          # [hop, K]
            fh = frames[hop:, c * K:(c + 1) * K]                          # [hop, K]
            # 50%-overlap add: out[:, w] = fl[:, w] + fh[:, w-1] (zero fill)
            o_ref[0, c] = (jnp.concatenate([fl, zcol], axis=1)
                           + jnp.concatenate([zcol, fh], axis=1))         # [hop, Kw]

    est = pl.pallas_call(
        kernel,
        out_shape=jax.ShapeDtypeStruct((M, C, hop, Kw), jnp.float32),
        grid=(M,),
        in_specs=[
            _full_spec(C * N, Bn),
            _full_spec(L, N),
            pl.BlockSpec((1, N, K), lambda m: (m, 0, 0)),
            pl.BlockSpec((1, Bn, K), lambda m: (m, 0, 0)),
        ],
        out_specs=pl.BlockSpec((1, C, hop, Kw), lambda m: (m, 0, 0, 0)),
        compiler_params=PARALLEL_1D,
    )(mask_w, dec_w, mixture_w, score)
    # lane-dense (Kw on lanes) in-kernel; final flatten is wrapper layout plumbing
    return est.transpose(0, 1, 3, 2).reshape(M, C, Kw * hop)              # [M, C, T_conv]


# ----------------------------------------------------------------------------
# Parameter construction (deterministic, xavier-like; blocks stacked)
# ----------------------------------------------------------------------------
def _xavier(key, shape):
    fan_out = shape[0]
    fan_in = 1
    for s in shape[1:]:
        fan_in *= s
    std = (2.0 / (fan_in + fan_out)) ** 0.5
    return std * jax.random.normal(key, shape, jnp.float32)


def init_params(key, cfg):
    N, L, B, H, P, X, R, C = (cfg[k] for k in 'NLBHPXRC')
    RX = R * X
    keys = iter(jax.random.split(key, 8 + RX * 8))
    bf16 = jnp.bfloat16
    params = {
        'enc_u': _xavier(next(keys), (N, L)).astype(bf16),
        'bottleneck_w': _xavier(next(keys), (B, N)).astype(bf16),
        'mask_w': _xavier(next(keys), (C * N, B)).astype(bf16),
        'dec_w': _xavier(next(keys), (L, N)).astype(bf16),
        'cln_gb': jnp.concatenate([_xavier(next(keys), (N, 1)),
                                   _xavier(next(keys), (N, 1))], axis=1),
    }
    w1, pw, pbs = [], [], []
    for _ in range(RX):
        w1.append(_xavier(next(keys), (H, B)))
        pw.append(_xavier(next(keys), (B, H)))
        dw = _xavier(next(keys), (H, P))
        g1 = _xavier(next(keys), (H, 1))
        b1 = _xavier(next(keys), (H, 1))
        g2 = _xavier(next(keys), (H, 1))
        b2 = _xavier(next(keys), (H, 1))
        a = jnp.full((H, 1), 0.25, jnp.float32)          # PReLU default weight
        pbs.append(jnp.concatenate([dw, g1, b1, g2, b2, a, a], axis=1))
    params['blk_w1'] = jnp.stack(w1).astype(bf16)        # [RX, H, B]
    params['blk_pw'] = jnp.stack(pw).astype(bf16)        # [RX, B, H]
    params['blk_pb'] = jnp.stack(pbs)                    # [RX, H, P+6] f32
    return params


# ----------------------------------------------------------------------------
# Full forward
# ----------------------------------------------------------------------------
def da_conv_tasnet_forward(params, mixture, cfg):
    N, L, B, H, P, X, R, C = (cfg[k] for k in 'NLBHPXRC')
    hop = L // 2
    M, T = mixture.shape
    assert L % 2 == 0 and T % hop == 0
    K = (T - L) // hop + 1
    W = T // hop                                          # == K + 1

    # Lane-dense framing view [M, hop, W] (long window axis on lanes); framing
    # finishes inside the encoder kernel — no [M, L, K] gather in HBM.
    win_t = mixture.reshape(M, W, hop).transpose(0, 2, 1)

    mixture_w, score = encoder_cln_bottleneck(
        params['enc_u'], params['cln_gb'], params['bottleneck_w'], win_t, K)

    score = temporal_blocks(params['blk_w1'], params['blk_pw'], params['blk_pb'],
                            score, P, X, R)
    feature = score                    # feat_loc='residual', locs=[(R-1, X-1)]

    est_source = mask_decode_overlap_add(
        params['mask_w'], params['dec_w'], mixture_w, score, C)

    T_conv = est_source.shape[-1]
    est_source = jnp.pad(est_source, ((0, 0), (0, 0), (0, T - T_conv)))
    return est_source, feature


# ----------------------------------------------------------------------------
if __name__ == "__main__":
    cfg = dict(N=16, L=8, B=16, H=32, P=3, X=2, R=2, C=2)
    M, T = 2, 64

    key = jax.random.PRNGKey(0)
    pkey, xkey = jax.random.split(key)
    params = init_params(pkey, cfg)
    mixture = jax.random.normal(xkey, (M, T), jnp.float32)

    fwd = jax.jit(lambda p, x: da_conv_tasnet_forward(p, x, cfg))
    est_source, feature = fwd(params, mixture)
    jax.block_until_ready(est_source)
    jax.block_until_ready(feature)

    K = (T - cfg['L']) // (cfg['L'] // 2) + 1
    assert est_source.shape == (M, cfg['C'], T), est_source.shape
    assert feature.shape == (M, cfg['B'], K), feature.shape
    print("KERNEL_OK")
</pallas_src>

<mosaic_0001>
module attributes {stable_mosaic.version = 11 : i64} {
  func.func @kernel(%arg0: i32, %arg1: memref<16x8xbf16, #tpu.memory_space<vmem>>, %arg2: memref<16x2xf32, #tpu.memory_space<vmem>>, %arg3: memref<16x16xbf16, #tpu.memory_space<vmem>>, %arg4: memref<1x4x16xf32, #tpu.memory_space<vmem>>, %arg5: memref<1x16x15xf32, #tpu.memory_space<vmem>>, %arg6: memref<1x16x15xf32, #tpu.memory_space<vmem>>) attributes {dimension_semantics = [#tpu.dimension_semantics<parallel>], iteration_bounds = array<i64: 2>, scalar_prefetch = 0 : i64, scratch_operands = 0 : i64, tpu.core_type = #tpu.core_type<tc>, window_params = [{pipeline_mode = #tpu.pipeline_mode<synchronous>, transform_indices = @transform_0, window_bounds = array<i64: 16, 8>}, {pipeline_mode = #tpu.pipeline_mode<synchronous>, transform_indices = @transform_1, window_bounds = array<i64: 16, 2>}, {pipeline_mode = #tpu.pipeline_mode<synchronous>, transform_indices = @transform_2, window_bounds = array<i64: 16, 16>}, {transform_indices = @transform_3, window_bounds = array<i64: 1, 4, 16>}, {transform_indices = @transform_4, window_bounds = array<i64: 1, 16, 15>}, {transform_indices = @transform_5, window_bounds = array<i64: 1, 16, 15>}]} {
    %c0 = arith.constant 0 : index
    %c0_0 = arith.constant 0 : index
    %c0_1 = arith.constant 0 : index
    %0 = vector.load %arg4[%c0, %c0_0, %c0_1] : memref<1x4x16xf32, #tpu.memory_space<vmem>>, vector<1x4x16xf32>
    %1 = vector.shape_cast %0 : vector<1x4x16xf32> to vector<4x16xf32>
    %2 = arith.truncf %1 : vector<4x16xf32> to vector<4x16xbf16>
    %c0_2 = arith.constant 0 : index
    %c0_3 = arith.constant 0 : index
    %3 = vector.load %arg1[%c0_2, %c0_3] : memref<16x8xbf16, #tpu.memory_space<vmem>>, vector<16x8xbf16>
    %4 = vector.extract_strided_slice %3 {offsets = [0, 0], sizes = [16, 4], strides = [1, 1]} : vector<16x8xbf16> to vector<16x4xbf16>
    %cst = arith.constant dense<0.000000e+00> : vector<16x16xf32>
    %5 = tpu.matmul %4, %2, %cst {dimension_numbers = #tpu.dot_dimension_numbers<[1], [0], [0], [1], [0, 0, 1, 1], [], []>} : vector<16x4xbf16>, vector<4x16xbf16>, vector<16x16xf32> -> vector<16x16xf32>
    %6 = vector.extract_strided_slice %3 {offsets = [0, 4], sizes = [16, 4], strides = [1, 1]} : vector<16x8xbf16> to vector<16x4xbf16>
    %cst_4 = arith.constant dense<0.000000e+00> : vector<16x16xf32>
    %7 = tpu.matmul %6, %2, %cst_4 {dimension_numbers = #tpu.dot_dimension_numbers<[1], [0], [0], [1], [0, 0, 1, 1], [], []>} : vector<16x4xbf16>, vector<4x16xbf16>, vector<16x16xf32> -> vector<16x16xf32>
    %8 = vector.extract_strided_slice %5 {offsets = [0, 0], sizes = [16, 15], strides = [1, 1]} : vector<16x16xf32> to vector<16x15xf32>
    %9 = vector.extract_strided_slice %7 {offsets = [0, 1], sizes = [16, 15], strides = [1, 1]} : vector<16x16xf32> to vector<16x15xf32>
    %10 = arith.addf %8, %9 : vector<16x15xf32>
    %cst_5 = arith.constant 0.000000e+00 : f32
    %11 = vector.broadcast %cst_5 : f32 to vector<16x15xf32>
    %12 = arith.maximumf %10, %11 : vector<16x15xf32>
    %c0_6 = arith.constant 0 : index
    %c0_7 = arith.constant 0 : index
    %c0_8 = arith.constant 0 : index
    %13 = vector.load %arg5[%c0_6, %c0_7, %c0_8] : memref<1x16x15xf32, #tpu.memory_space<vmem>>, vector<1x16x15xf32>
    %14 = vector.shape_cast %13 : vector<1x16x15xf32> to vector<16x15xf32>
    %15 = vector.shape_cast %12 : vector<16x15xf32> to vector<1x16x15xf32>
    tpu.vector_store %arg5[%c0_6, %c0_7, %c0_8], %15 {strides = array<i32>} : memref<1x16x15xf32, #tpu.memory_space<vmem>>, vector<1x16x15xf32>,
    %cst_9 = arith.constant dense<0.000000e+00> : vector<15xf32>
    %16 = vector.multi_reduction <add>, %12, %cst_9 [0] : vector<16x15xf32> to vector<15xf32>
    %17 = vector.shape_cast %16 : vector<15xf32> to vector<1x15xf32>
    %cst_10 = arith.constant 6.250000e-02 : f32
    %18 = vector.broadcast %cst_10 : f32 to vector<1x15xf32>
    %19 = arith.mulf %17, %18 : vector<1x15xf32>
    %20 = arith.mulf %12, %12 : vector<16x15xf32>
    %cst_11 = arith.constant dense<0.000000e+00> : vector<15xf32>
    %21 = vector.multi_reduction <add>, %20, %cst_11 [0] : vector<16x15xf32> to vector<15xf32>
    %22 = vector.shape_cast %21 : vector<15xf32> to vector<1x15xf32>
    %cst_12 = arith.constant 6.250000e-02 : f32
    %23 = vector.broadcast %cst_12 : f32 to vector<1x15xf32>
    %24 = arith.mulf %22, %23 : vector<1x15xf32>
    %25 = arith.mulf %19, %19 : vector<1x15xf32>
    %26 = arith.subf %24, %25 : vector<1x15xf32>
    %c0_13 = arith.constant 0 : index
    %c0_14 = arith.constant 0 : index
    %27 = vector.load %arg2[%c0_13, %c0_14] : memref<16x2xf32, #tpu.memory_space<vmem>>, vector<16x1xf32>
    %c0_15 = arith.constant 0 : index
    %c1 = arith.constant 1 : index
    %28 = vector.load %arg2[%c0_15, %c1] : memref<16x2xf32, #tpu.memory_space<vmem>>, vector<16x1xf32>
    %29 = vector.broadcast %19 : vector<1x15xf32> to vector<16x15xf32>
    %30 = arith.subf %12, %29 : vector<16x15xf32>
    %31 = vector.broadcast %27 : vector<16x1xf32> to vector<16x15xf32>
    %32 = arith.mulf %31, %30 : vector<16x15xf32>
    %cst_16 = arith.constant 9.99999993E-9 : f32
    %33 = vector.broadcast %cst_16 : f32 to vector<1x15xf32>
    %34 = arith.addf %26, %33 : vector<1x15xf32>
    %35 = math.rsqrt %34 : vector<1x15xf32>
    %36 = vector.broadcast %35 : vector<1x15xf32> to vector<16x15xf32>
    %37 = arith.mulf %32, %36 : vector<16x15xf32>
    %38 = vector.broadcast %28 : vector<16x1xf32> to vector<16x15xf32>
    %39 = arith.addf %37, %38 : vector<16x15xf32>
    %c0_17 = arith.constant 0 : index
    %c0_18 = arith.constant 0 : index
    %40 = vector.load %arg3[%c0_17, %c0_18] : memref<16x16xbf16, #tpu.memory_space<vmem>>, vector<16x16xbf16>
    %41 = arith.truncf %39 : vector<16x15xf32> to vector<16x15xbf16>
    %cst_19 = arith.constant dense<0.000000e+00> : vector<16x15xf32>
    %42 = tpu.matmul %40, %41, %cst_19 {dimension_numbers = #tpu.dot_dimension_numbers<[1], [0], [0], [1], [0, 0, 1, 1], [], []>} : vector<16x16xbf16>, vector<16x15xbf16>, vector<16x15xf32> -> vector<16x15xf32>
    %c0_20 = arith.constant 0 : index
    %c0_21 = arith.constant 0 : index
    %c0_22 = arith.constant 0 : index
    %43 = vector.load %arg6[%c0_20, %c0_21, %c0_22] : memref<1x16x15xf32, #tpu.memory_space<vmem>>, vector<1x16x15xf32>
    %44 = vector.shape_cast %43 : vector<1x16x15xf32> to vector<16x15xf32>
    %45 = vector.shape_cast %42 : vector<16x15xf32> to vector<1x16x15xf32>
    tpu.vector_store %arg6[%c0_20, %c0_21, %c0_22], %45 {strides = array<i32>} : memref<1x16x15xf32, #tpu.memory_space<vmem>>, vector<1x16x15xf32>,
    return
  }
  func.func @transform_0(%arg0: i32) -> (i32, i32) {
    %c0_i32 = arith.constant 0 : i32
    %c0_i32_0 = arith.constant 0 : i32
    %c0_i32_1 = arith.constant 0 : i32
    return %c0_i32, %c0_i32_0 : i32, i32
  }
  func.func @transform_1(%arg0: i32) -> (i32, i32) {
    %c0_i32 = arith.constant 0 : i32
    %c0_i32_0 = arith.constant 0 : i32
    %c0_i32_1 = arith.constant 0 : i32
    return %c0_i32, %c0_i32_0 : i32, i32
  }
  func.func @transform_2(%arg0: i32) -> (i32, i32) {
    %c0_i32 = arith.constant 0 : i32
    %c0_i32_0 = arith.constant 0 : i32
    %c0_i32_1 = arith.constant 0 : i32
    return %c0_i32, %c0_i32_0 : i32, i32
  }
  func.func @transform_3(%arg0: i32) -> (i32, i32, i32) {
    %c0_i32 = arith.constant 0 : i32
    %c0_i32_0 = arith.constant 0 : i32
    %c0_i32_1 = arith.constant 0 : i32
    return %arg0, %c0_i32, %c0_i32_0 : i32, i32, i32
  }
  func.func @transform_4(%arg0: i32) -> (i32, i32, i32) {
    %c0_i32 = arith.constant 0 : i32
    %c0_i32_0 = arith.constant 0 : i32
    %c0_i32_1 = arith.constant 0 : i32
    return %arg0, %c0_i32, %c0_i32_0 : i32, i32, i32
  }
  func.func @transform_5(%arg0: i32) -> (i32, i32, i32) {
    %c0_i32 = arith.constant 0 : i32
    %c0_i32_0 = arith.constant 0 : i32
    %c0_i32_1 = arith.constant 0 : i32
    return %arg0, %c0_i32, %c0_i32_0 : i32, i32, i32
  }
}

module attributes {stable_mosaic.version = 11 : i64} {
  func.func @kernel(%arg0: i32, %arg1: memref<32x16xbf16, #tpu.memory_space<vmem>>, %arg2: memref<8x16xbf16, #tpu.memory_space<vmem>>, %arg3: memref<1x16x15xf32, #tpu.memory_space<vmem>>, %arg4: memref<1x16x15xf32, #tpu.memory_space<vmem>>, %arg5: memref<1x2x4x16xf32, #tpu.memory_space<vmem>>) attributes {dimension_semantics = [#tpu.dimension_semantics<parallel>], iteration_bounds = array<i64: 2>, scalar_prefetch = 0 : i64, scratch_operands = 0 : i64, tpu.core_type = #tpu.core_type<tc>, window_params = [{pipeline_mode = #tpu.pipeline_mode<synchronous>, transform_indices = @transform_0, window_bounds = array<i64: 32, 16>}, {pipeline_mode = #tpu.pipeline_mode<synchronous>, transform_indices = @transform_1, window_bounds = array<i64: 8, 16>}, {transform_indices = @transform_2, window_bounds = array<i64: 1, 16, 15>}, {transform_indices = @transform_3, window_bounds = array<i64: 1, 16, 15>}, {transform_indices = @transform_4, window_bounds = array<i64: 1, 2, 4, 16>}]} {
    %c0 = arith.constant 0 : index
    %c0_0 = arith.constant 0 : index
    %c0_1 = arith.constant 0 : index
    %0 = vector.load %arg4[%c0, %c0_0, %c0_1] : memref<1x16x15xf32, #tpu.memory_space<vmem>>, vector<1x16x15xf32>
    %1 = vector.shape_cast %0 : vector<1x16x15xf32> to vector<16x15xf32>
    %2 = arith.truncf %1 : vector<16x15xf32> to vector<16x15xbf16>
    %c0_2 = arith.constant 0 : index
    %c0_3 = arith.constant 0 : index
    %3 = vector.load %arg1[%c0_2, %c0_3] : memref<32x16xbf16, #tpu.memory_space<vmem>>, vector<32x16xbf16>
    %cst = arith.constant dense<0.000000e+00> : vector<32x15xf32>
    %4 = tpu.matmul %3, %2, %cst {dimension_numbers = #tpu.dot_dimension_numbers<[1], [0], [0], [1], [0, 0, 1, 1], [], []>} : vector<32x16xbf16>, vector<16x15xbf16>, vector<32x15xf32> -> vector<32x15xf32>
    %cst_4 = arith.constant 0.000000e+00 : f32
    %5 = vector.broadcast %cst_4 : f32 to vector<32x15xf32>
    %6 = arith.maximumf %4, %5 : vector<32x15xf32>
    %c0_5 = arith.constant 0 : index
    %c0_6 = arith.constant 0 : index
    %c0_7 = arith.constant 0 : index
    %7 = vector.load %arg3[%c0_5, %c0_6, %c0_7] : memref<1x16x15xf32, #tpu.memory_space<vmem>>, vector<1x16x15xf32>
    %8 = vector.shape_cast %7 : vector<1x16x15xf32> to vector<16x15xf32>
    %9 = vector.extract_strided_slice %6 {offsets = [0, 0], sizes = [16, 15], strides = [1, 1]} : vector<32x15xf32> to vector<16x15xf32>
    %10 = arith.mulf %8, %9 : vector<16x15xf32>
    %11 = vector.extract_strided_slice %6 {offsets = [16, 0], sizes = [16, 15], strides = [1, 1]} : vector<32x15xf32> to vector<16x15xf32>
    %12 = arith.mulf %8, %11 : vector<16x15xf32>
    %13 = tpu.concatenate %10, %12 in 1 : vector<16x15xf32>, vector<16x15xf32> -> vector<16x30xf32>
    %c0_8 = arith.constant 0 : index
    %c0_9 = arith.constant 0 : index
    %14 = vector.load %arg2[%c0_8, %c0_9] : memref<8x16xbf16, #tpu.memory_space<vmem>>, vector<8x16xbf16>
    %15 = arith.truncf %13 : vector<16x30xf32> to vector<16x30xbf16>
    %cst_10 = arith.constant dense<0.000000e+00> : vector<8x30xf32>
    %16 = tpu.matmul %14, %15, %cst_10 {dimension_numbers = #tpu.dot_dimension_numbers<[1], [0], [0], [1], [0, 0, 1, 1], [], []>} : vector<8x16xbf16>, vector<16x30xbf16>, vector<8x30xf32> -> vector<8x30xf32>
    %cst_11 = arith.constant 0.000000e+00 : f32
    %17 = vector.broadcast %cst_11 : f32 to vector<4x1xf32>
    %18 = vector.extract_strided_slice %16 {offsets = [0, 0], sizes = [4, 15], strides = [1, 1]} : vector<8x30xf32> to vector<4x15xf32>
    %19 = vector.extract_strided_slice %16 {offsets = [4, 0], sizes = [4, 15], strides = [1, 1]} : vector<8x30xf32> to vector<4x15xf32>
    %20 = tpu.concatenate %18, %17 in 1 : vector<4x15xf32>, vector<4x1xf32> -> vector<4x16xf32>
    %21 = tpu.concatenate %17, %19 in 1 : vector<4x1xf32>, vector<4x15xf32> -> vector<4x16xf32>
    %22 = arith.addf %20, %21 : vector<4x16xf32>
    %c0_12 = arith.constant 0 : index
    %c0_13 = arith.constant 0 : index
    %c0_14 = arith.constant 0 : index
    %c0_15 = arith.constant 0 : index
    %23 = vector.load %arg5[%c0_12, %c0_13, %c0_14, %c0_15] : memref<1x2x4x16xf32, #tpu.memory_space<vmem>>, vector<1x1x4x16xf32>
    %24 = vector.shape_cast %23 : vector<1x1x4x16xf32> to vector<4x16xf32>
    %25 = vector.shape_cast %22 : vector<4x16xf32> to vector<1x1x4x16xf32>
    tpu.vector_store %arg5[%c0_12, %c0_13, %c0_14, %c0_15], %25 {strides = array<i32>} : memref<1x2x4x16xf32, #tpu.memory_space<vmem>>, vector<1x1x4x16xf32>,
    %26 = vector.extract_strided_slice %16 {offsets = [0, 15], sizes = [4, 15], strides = [1, 1]} : vector<8x30xf32> to vector<4x15xf32>
    %27 = vector.extract_strided_slice %16 {offsets = [4, 15], sizes = [4, 15], strides = [1, 1]} : vector<8x30xf32> to vector<4x15xf32>
    %28 = tpu.concatenate %26, %17 in 1 : vector<4x15xf32>, vector<4x1xf32> -> vector<4x16xf32>
    %29 = tpu.concatenate %17, %27 in 1 : vector<4x1xf32>, vector<4x15xf32> -> vector<4x16xf32>
    %30 = arith.addf %28, %29 : vector<4x16xf32>
    %c0_16 = arith.constant 0 : index
    %c1 = arith.constant 1 : index
    %c0_17 = arith.constant 0 : index
    %c0_18 = arith.constant 0 : index
    %31 = vector.load %arg5[%c0_16, %c1, %c0_17, %c0_18] : memref<1x2x4x16xf32, #tpu.memory_space<vmem>>, vector<1x1x4x16xf32>
    %32 = vector.shape_cast %31 : vector<1x1x4x16xf32> to vector<4x16xf32>
    %33 = vector.shape_cast %30 : vector<4x16xf32> to vector<1x1x4x16xf32>
    tpu.vector_store %arg5[%c0_16, %c1, %c0_17, %c0_18], %33 {strides = array<i32>} : memref<1x2x4x16xf32, #tpu.memory_space<vmem>>, vector<1x1x4x16xf32>,
    return
  }
  func.func @transform_0(%arg0: i32) -> (i32, i32) {
    %c0_i32 = arith.constant 0 : i32
    %c0_i32_0 = arith.constant 0 : i32
    %c0_i32_1 = arith.constant 0 : i32
    return %c0_i32, %c0_i32_0 : i32, i32
  }
  func.func @transform_1(%arg0: i32) -> (i32, i32) {
    %c0_i32 = arith.constant 0 : i32
    %c0_i32_0 = arith.constant 0 : i32
    %c0_i32_1 = arith.constant 0 : i32
    return %c0_i32, %c0_i32_0 : i32, i32
  }
  func.func @transform_2(%arg0: i32) -> (i32, i32, i32) {
    %c0_i32 = arith.constant 0 : i32
    %c0_i32_0 = arith.constant 0 : i32
    %c0_i32_1 = arith.constant 0 : i32
    return %arg0, %c0_i32, %c0_i32_0 : i32, i32, i32
  }
  func.func @transform_3(%arg0: i32) -> (i32, i32, i32) {
    %c0_i32 = arith.constant 0 : i32
    %c0_i32_0 = arith.constant 0 : i32
    %c0_i32_1 = arith.constant 0 : i32
    return %arg0, %c0_i32, %c0_i32_0 : i32, i32, i32
  }
  func.func @transform_4(%arg0: i32) -> (i32, i32, i32, i32) {
    %c0_i32 = arith.constant 0 : i32
    %c0_i32_0 = arith.constant 0 : i32
    %c0_i32_1 = arith.constant 0 : i32
    %c0_i32_2 = arith.constant 0 : i32
    return %arg0, %c0_i32, %c0_i32_0, %c0_i32_1 : i32, i32, i32, i32
  }
}

module attributes {stable_mosaic.version = 11 : i64} {
  func.func @kernel(%arg0: i32, %arg1: memref<4x32x16xbf16, #tpu.memory_space<vmem>>, %arg2: memref<4x16x32xbf16, #tpu.memory_space<vmem>>, %arg3: memref<4x32x9xf32, #tpu.memory_space<vmem>>, %arg4: memref<1x16x15xf32, #tpu.memory_space<vmem>>, %arg5: memref<1x16x15xf32, #tpu.memory_space<vmem>>, %arg6: memref<32x19xf32, #tpu.memory_space<vmem>>) attributes {dimension_semantics = [#tpu.dimension_semantics<parallel>], iteration_bounds = array<i64: 2>, scalar_prefetch = 0 : i64, scratch_operands = 1 : i64, tpu.core_type = #tpu.core_type<tc>, window_params = [{pipeline_mode = #tpu.pipeline_mode<synchronous>, transform_indices = @transform_0, window_bounds = array<i64: 4, 32, 16>}, {pipeline_mode = #tpu.pipeline_mode<synchronous>, transform_indices = @transform_1, window_bounds = array<i64: 4, 16, 32>}, {pipeline_mode = #tpu.pipeline_mode<synchronous>, transform_indices = @transform_2, window_bounds = array<i64: 4, 32, 9>}, {transform_indices = @transform_3, window_bounds = array<i64: 1, 16, 15>}, {transform_indices = @transform_4, window_bounds = array<i64: 1, 16, 15>}]} {
    %cst = arith.constant 0.000000e+00 : f32
    %0 = vector.broadcast %cst : f32 to vector<32x19xf32>
    %c0 = arith.constant 0 : index
    %c0_0 = arith.constant 0 : index
    %1 = vector.load %arg6[%c0, %c0_0] : memref<32x19xf32, #tpu.memory_space<vmem>>, vector<32x19xf32>
    tpu.vector_store %arg6[%c0, %c0_0], %0 {strides = array<i32>} : memref<32x19xf32, #tpu.memory_space<vmem>>, vector<32x19xf32>,
    %c0_1 = arith.constant 0 : index
    %c0_2 = arith.constant 0 : index
    %c0_3 = arith.constant 0 : index
    %2 = vector.load %arg4[%c0_1, %c0_2, %c0_3] : memref<1x16x15xf32, #tpu.memory_space<vmem>>, vector<1x16x15xf32>
    %3 = vector.shape_cast %2 : vector<1x16x15xf32> to vector<16x15xf32>
    %c0_i32 = arith.constant 0 : i32
    %c2_i32 = arith.constant 2 : i32
    %4 = arith.addi %c0_i32, %c2_i32 : i32
    %c1_i32 = arith.constant 1 : i32
    %5 = scf.for %arg7 = %c0_i32 to %4 step %c1_i32 iter_args(%arg8 = %3) -> (vector<16x15xf32>)  : i32 {
      %c2_i32_8 = arith.constant 2 : i32
      %9 = arith.muli %arg7, %c2_i32_8 : i32
      %c0_i32_9 = arith.constant 0 : i32
      %10 = arith.addi %9, %c0_i32_9 : i32
      %11 = arith.index_cast %10 : i32 to index
      %c0_10 = arith.constant 0 : index
      %c0_11 = arith.constant 0 : index
      %12 = vector.load %arg3[%11, %c0_10, %c0_11] : memref<4x32x9xf32, #tpu.memory_space<vmem>>, vector<1x32x9xf32>
      %13 = vector.shape_cast %12 : vector<1x32x9xf32> to vector<32x9xf32>
      %14 = vector.extract_strided_slice %13 {offsets = [0, 0], sizes = [32, 3], strides = [1, 1]} : vector<32x9xf32> to vector<32x3xf32>
      %15 = vector.extract_strided_slice %13 {offsets = [0, 3], sizes = [32, 1], strides = [1, 1]} : vector<32x9xf32> to vector<32x1xf32>
      %16 = vector.extract_strided_slice %13 {offsets = [0, 4], sizes = [32, 1], strides = [1, 1]} : vector<32x9xf32> to vector<32x1xf32>
      %17 = vector.extract_strided_slice %13 {offsets = [0, 5], sizes = [32, 1], strides = [1, 1]} : vector<32x9xf32> to vector<32x1xf32>
      %18 = vector.extract_strided_slice %13 {offsets = [0, 6], sizes = [32, 1], strides = [1, 1]} : vector<32x9xf32> to vector<32x1xf32>
      %19 = vector.extract_strided_slice %13 {offsets = [0, 7], sizes = [32, 1], strides = [1, 1]} : vector<32x9xf32> to vector<32x1xf32>
      %20 = vector.extract_strided_slice %13 {offsets = [0, 8], sizes = [32, 1], strides = [1, 1]} : vector<32x9xf32> to vector<32x1xf32>
      %21 = arith.index_cast %10 : i32 to index
      %c0_12 = arith.constant 0 : index
      %c0_13 = arith.constant 0 : index
      %22 = vector.load %arg1[%21, %c0_12, %c0_13] : memref<4x32x16xbf16, #tpu.memory_space<vmem>>, vector<1x32x16xbf16>
      %23 = vector.shape_cast %22 : vector<1x32x16xbf16> to vector<32x16xbf16>
      %24 = arith.truncf %arg8 : vector<16x15xf32> to vector<16x15xbf16>
      %cst_14 = arith.constant dense<0.000000e+00> : vector<32x15xf32>
      %25 = tpu.matmul %23, %24, %cst_14 {dimension_numbers = #tpu.dot_dimension_numbers<[1], [0], [0], [1], [0, 0, 1, 1], [], []>} : vector<32x16xbf16>, vector<16x15xbf16>, vector<32x15xf32> -> vector<32x15xf32>
      %cst_15 = arith.constant 0.000000e+00 : f32
      %26 = vector.broadcast %cst_15 : f32 to vector<32x15xf32>
      %27 = arith.cmpf oge, %25, %26 : vector<32x15xf32>
      %28 = vector.broadcast %19 : vector<32x1xf32> to vector<32x15xf32>
      %29 = arith.mulf %28, %25 : vector<32x15xf32>
      %30 = arith.select %27, %25, %29 : vector<32x15xi1>, vector<32x15xf32>
      %31 = vector.shape_cast %30 : vector<32x15xf32> to vector<1x32x15xf32>
      %cst_16 = arith.constant dense<0.000000e+00> : vector<1xf32>
      %32 = vector.multi_reduction <add>, %31, %cst_16 [1, 2] : vector<1x32x15xf32> to vector<1xf32>
      %33 = vector.shape_cast %32 : vector<1xf32> to vector<1x1x1xf32>
      %34 = vector.extract %33[0, 0, 0] : f32 from vector<1x1x1xf32>
      %cst_17 = arith.constant 0.00208333344 : f32
      %35 = arith.mulf %34, %cst_17 : f32
      %36 = arith.mulf %30, %30 : vector<32x15xf32>
      %37 = vector.shape_cast %36 : vector<32x15xf32> to vector<1x32x15xf32>
      %cst_18 = arith.constant dense<0.000000e+00> : vector<1xf32>
      %38 = vector.multi_reduction <add>, %37, %cst_18 [1, 2] : vector<1x32x15xf32> to vector<1xf32>
      %39 = vector.shape_cast %38 : vector<1xf32> to vector<1x1x1xf32>
      %40 = vector.extract %39[0, 0, 0] : f32 from vector<1x1x1xf32>
      %cst_19 = arith.constant 0.00208333344 : f32
      %41 = arith.mulf %40, %cst_19 : f32
      %42 = arith.mulf %35, %35 : f32
      %43 = arith.subf %41, %42 : f32
      %44 = vector.broadcast %35 : f32 to vector<32x15xf32>
      %45 = arith.subf %30, %44 : vector<32x15xf32>
      %46 = vector.broadcast %15 : vector<32x1xf32> to vector<32x15xf32>
      %47 = arith.mulf %46, %45 : vector<32x15xf32>
      %cst_20 = arith.constant 9.99999993E-9 : f32
      %48 = arith.addf %43, %cst_20 : f32
      %49 = math.rsqrt %48 : f32
      %50 = vector.broadcast %49 : f32 to vector<32x15xf32>
      %51 = arith.mulf %47, %50 : vector<32x15xf32>
      %52 = vector.broadcast %16 : vector<32x1xf32> to vector<32x15xf32>
      %53 = arith.addf %51, %52 : vector<32x15xf32>
      %c0_21 = arith.constant 0 : index
      %c2 = arith.constant 2 : index
      %54 = vector.load %arg6[%c0_21, %c2] : memref<32x19xf32, #tpu.memory_space<vmem>>, vector<32x15xf32>
      tpu.vector_store %arg6[%c0_21, %c2], %53 {strides = array<i32>} : memref<32x19xf32, #tpu.memory_space<vmem>>, vector<32x15xf32>,
      %55 = vector.extract_strided_slice %14 {offsets = [0, 0], sizes = [32, 1], strides = [1, 1]} : vector<32x3xf32> to vector<32x1xf32>
      %c0_22 = arith.constant 0 : index
      %c1 = arith.constant 1 : index
      %56 = vector.load %arg6[%c0_22, %c1] : memref<32x19xf32, #tpu.memory_space<vmem>>, vector<32x15xf32>
      %57 = vector.broadcast %55 : vector<32x1xf32> to vector<32x15xf32>
      %58 = arith.mulf %57, %56 : vector<32x15xf32>
      %59 = vector.extract_strided_slice %14 {offsets = [0, 1], sizes = [32, 1], strides = [1, 1]} : vector<32x3xf32> to vector<32x1xf32>
      %c0_23 = arith.constant 0 : index
      %c2_24 = arith.constant 2 : index
      %60 = vector.load %arg6[%c0_23, %c2_24] : memref<32x19xf32, #tpu.memory_space<vmem>>, vector<32x15xf32>
      %61 = vector.broadcast %59 : vector<32x1xf32> to vector<32x15xf32>
      %62 = arith.mulf %61, %60 : vector<32x15xf32>
      %63 = arith.addf %58, %62 : vector<32x15xf32>
      %64 = vector.extract_strided_slice %14 {offsets = [0, 2], sizes = [32, 1], strides = [1, 1]} : vector<32x3xf32> to vector<32x1xf32>
      %c0_25 = arith.constant 0 : index
      %c3 = arith.constant 3 : index
      %65 = vector.load %arg6[%c0_25, %c3] : memref<32x19xf32, #tpu.memory_space<vmem>>, vector<32x15xf32>
      %66 = vector.broadcast %64 : vector<32x1xf32> to vector<32x15xf32>
      %67 = arith.mulf %66, %65 : vector<32x15xf32>
      %68 = arith.addf %63, %67 : vector<32x15xf32>
      %cst_26 = arith.constant 0.000000e+00 : f32
      %69 = vector.broadcast %cst_26 : f32 to vector<32x15xf32>
      %70 = arith.cmpf oge, %68, %69 : vector<32x15xf32>
      %71 = vector.broadcast %20 : vector<32x1xf32> to vector<32x15xf32>
      %72 = arith.mulf %71, %68 : vector<32x15xf32>
      %73 = arith.select %70, %68, %72 : vector<32x15xi1>, vector<32x15xf32>
      %74 = vector.shape_cast %73 : vector<32x15xf32> to vector<1x32x15xf32>
      %cst_27 = arith.constant dense<0.000000e+00> : vector<1xf32>
      %75 = vector.multi_reduction <add>, %74, %cst_27 [1, 2] : vector<1x32x15xf32> to vector<1xf32>
      %76 = vector.shape_cast %75 : vector<1xf32> to vector<1x1x1xf32>
      %77 = vector.extract %76[0, 0, 0] : f32 from vector<1x1x1xf32>
      %cst_28 = arith.constant 0.00208333344 : f32
      %78 = arith.mulf %77, %cst_28 : f32
      %79 = arith.mulf %73, %73 : vector<32x15xf32>
      %80 = vector.shape_cast %79 : vector<32x15xf32> to vector<1x32x15xf32>
      %cst_29 = arith.constant dense<0.000000e+00> : vector<1xf32>
      %81 = vector.multi_reduction <add>, %80, %cst_29 [1, 2] : vector<1x32x15xf32> to vector<1xf32>
      %82 = vector.shape_cast %81 : vector<1xf32> to vector<1x1x1xf32>
      %83 = vector.extract %82[0, 0, 0] : f32 from vector<1x1x1xf32>
      %cst_30 = arith.constant 0.00208333344 : f32
      %84 = arith.mulf %83, %cst_30 : f32
      %85 = arith.mulf %78, %78 : f32
      %86 = arith.subf %84, %85 : f32
      %87 = vector.broadcast %78 : f32 to vector<32x15xf32>
      %88 = arith.subf %73, %87 : vector<32x15xf32>
      %89 = vector.broadcast %17 : vector<32x1xf32> to vector<32x15xf32>
      %90 = arith.mulf %89, %88 : vector<32x15xf32>
      %cst_31 = arith.constant 9.99999993E-9 : f32
      %91 = arith.addf %86, %cst_31 : f32
      %92 = math.rsqrt %91 : f32
      %93 = vector.broadcast %92 : f32 to vector<32x15xf32>
      %94 = arith.mulf %90, %93 : vector<32x15xf32>
      %95 = vector.broadcast %18 : vector<32x1xf32> to vector<32x15xf32>
      %96 = arith.addf %94, %95 : vector<32x15xf32>
      %97 = arith.index_cast %10 : i32 to index
      %c0_32 = arith.constant 0 : index
      %c0_33 = arith.constant 0 : index
      %98 = vector.load %arg2[%97, %c0_32, %c0_33] : memref<4x16x32xbf16, #tpu.memory_space<vmem>>, vector<1x16x32xbf16>
      %99 = vector.shape_cast %98 : vector<1x16x32xbf16> to vector<16x32xbf16>
      %100 = arith.truncf %96 : vector<32x15xf32> to vector<32x15xbf16>
      %cst_34 = arith.constant dense<0.000000e+00> : vector<16x15xf32>
      %101 = tpu.matmul %99, %100, %cst_34 {dimension_numbers = #tpu.dot_dimension_numbers<[1], [0], [0], [1], [0, 0, 1, 1], [], []>} : vector<16x32xbf16>, vector<32x15xbf16>, vector<16x15xf32> -> vector<16x15xf32>
      %102 = arith.addf %arg8, %101 : vector<16x15xf32>
      %c2_i32_35 = arith.constant 2 : i32
      %103 = arith.muli %arg7, %c2_i32_35 : i32
      %c1_i32_36 = arith.constant 1 : i32
      %104 = arith.addi %103, %c1_i32_36 : i32
      %105 = arith.index_cast %104 : i32 to index
      %c0_37 = arith.constant 0 : index
      %c0_38 = arith.constant 0 : index
      %106 = vector.load %arg3[%105, %c0_37, %c0_38] : memref<4x32x9xf32, #tpu.memory_space<vmem>>, vector<1x32x9xf32>
      %107 = vector.shape_cast %106 : vector<1x32x9xf32> to vector<32x9xf32>
      %108 = vector.extract_strided_slice %107 {offsets = [0, 0], sizes = [32, 3], strides = [1, 1]} : vector<32x9xf32> to vector<32x3xf32>
      %109 = vector.extract_strided_slice %107 {offsets = [0, 3], sizes = [32, 1], strides = [1, 1]} : vector<32x9xf32> to vector<32x1xf32>
      %110 = vector.extract_strided_slice %107 {offsets = [0, 4], sizes = [32, 1], strides = [1, 1]} : vector<32x9xf32> to vector<32x1xf32>
      %111 = vector.extract_strided_slice %107 {offsets = [0, 5], sizes = [32, 1], strides = [1, 1]} : vector<32x9xf32> to vector<32x1xf32>
      %112 = vector.extract_strided_slice %107 {offsets = [0, 6], sizes = [32, 1], strides = [1, 1]} : vector<32x9xf32> to vector<32x1xf32>
      %113 = vector.extract_strided_slice %107 {offsets = [0, 7], sizes = [32, 1], strides = [1, 1]} : vector<32x9xf32> to vector<32x1xf32>
      %114 = vector.extract_strided_slice %107 {offsets = [0, 8], sizes = [32, 1], strides = [1, 1]} : vector<32x9xf32> to vector<32x1xf32>
      %115 = arith.index_cast %104 : i32 to index
      %c0_39 = arith.constant 0 : index
      %c0_40 = arith.constant 0 : index
      %116 = vector.load %arg1[%115, %c0_39, %c0_40] : memref<4x32x16xbf16, #tpu.memory_space<vmem>>, vector<1x32x16xbf16>
      %117 = vector.shape_cast %116 : vector<1x32x16xbf16> to vector<32x16xbf16>
      %118 = arith.truncf %102 : vector<16x15xf32> to vector<16x15xbf16>
      %cst_41 = arith.constant dense<0.000000e+00> : vector<32x15xf32>
      %119 = tpu.matmul %117, %118, %cst_41 {dimension_numbers = #tpu.dot_dimension_numbers<[1], [0], [0], [1], [0, 0, 1, 1], [], []>} : vector<32x16xbf16>, vector<16x15xbf16>, vector<32x15xf32> -> vector<32x15xf32>
      %cst_42 = arith.constant 0.000000e+00 : f32
      %120 = vector.broadcast %cst_42 : f32 to vector<32x15xf32>
      %121 = arith.cmpf oge, %119, %120 : vector<32x15xf32>
      %122 = vector.broadcast %113 : vector<32x1xf32> to vector<32x15xf32>
      %123 = arith.mulf %122, %119 : vector<32x15xf32>
      %124 = arith.select %121, %119, %123 : vector<32x15xi1>, vector<32x15xf32>
      %125 = vector.shape_cast %124 : vector<32x15xf32> to vector<1x32x15xf32>
      %cst_43 = arith.constant dense<0.000000e+00> : vector<1xf32>
      %126 = vector.multi_reduction <add>, %125, %cst_43 [1, 2] : vector<1x32x15xf32> to vector<1xf32>
      %127 = vector.shape_cast %126 : vector<1xf32> to vector<1x1x1xf32>
      %128 = vector.extract %127[0, 0, 0] : f32 from vector<1x1x1xf32>
      %cst_44 = arith.constant 0.00208333344 : f32
      %129 = arith.mulf %128, %cst_44 : f32
      %130 = arith.mulf %124, %124 : vector<32x15xf32>
      %131 = vector.shape_cast %130 : vector<32x15xf32> to vector<1x32x15xf32>
      %cst_45 = arith.constant dense<0.000000e+00> : vector<1xf32>
      %132 = vector.multi_reduction <add>, %131, %cst_45 [1, 2] : vector<1x32x15xf32> to vector<1xf32>
      %133 = vector.shape_cast %132 : vector<1xf32> to vector<1x1x1xf32>
      %134 = vector.extract %133[0, 0, 0] : f32 from vector<1x1x1xf32>
      %cst_46 = arith.constant 0.00208333344 : f32
      %135 = arith.mulf %134, %cst_46 : f32
      %136 = arith.mulf %129, %129 : f32
      %137 = arith.subf %135, %136 : f32
      %138 = vector.broadcast %129 : f32 to vector<32x15xf32>
      %139 = arith.subf %124, %138 : vector<32x15xf32>
      %140 = vector.broadcast %109 : vector<32x1xf32> to vector<32x15xf32>
      %141 = arith.mulf %140, %139 : vector<32x15xf32>
      %cst_47 = arith.constant 9.99999993E-9 : f32
      %142 = arith.addf %137, %cst_47 : f32
      %143 = math.rsqrt %142 : f32
      %144 = vector.broadcast %143 : f32 to vector<32x15xf32>
      %145 = arith.mulf %141, %144 : vector<32x15xf32>
      %146 = vector.broadcast %110 : vector<32x1xf32> to vector<32x15xf32>
      %147 = arith.addf %145, %146 : vector<32x15xf32>
      %c0_48 = arith.constant 0 : index
      %c2_49 = arith.constant 2 : index
      %148 = vector.load %arg6[%c0_48, %c2_49] : memref<32x19xf32, #tpu.memory_space<vmem>>, vector<32x15xf32>
      tpu.vector_store %arg6[%c0_48, %c2_49], %147 {strides = array<i32>} : memref<32x19xf32, #tpu.memory_space<vmem>>, vector<32x15xf32>,
      %149 = vector.extract_strided_slice %108 {offsets = [0, 0], sizes = [32, 1], strides = [1, 1]} : vector<32x3xf32> to vector<32x1xf32>
      %c0_50 = arith.constant 0 : index
      %c0_51 = arith.constant 0 : index
      %150 = vector.load %arg6[%c0_50, %c0_51] : memref<32x19xf32, #tpu.memory_space<vmem>>, vector<32x15xf32>
      %151 = vector.broadcast %149 : vector<32x1xf32> to vector<32x15xf32>
      %152 = arith.mulf %151, %150 : vector<32x15xf32>
      %153 = vector.extract_strided_slice %108 {offsets = [0, 1], sizes = [32, 1], strides = [1, 1]} : vector<32x3xf32> to vector<32x1xf32>
      %c0_52 = arith.constant 0 : index
      %c2_53 = arith.constant 2 : index
      %154 = vector.load %arg6[%c0_52, %c2_53] : memref<32x19xf32, #tpu.memory_space<vmem>>, vector<32x15xf32>
      %155 = vector.broadcast %153 : vector<32x1xf32> to vector<32x15xf32>
      %156 = arith.mulf %155, %154 : vector<32x15xf32>
      %157 = arith.addf %152, %156 : vector<32x15xf32>
      %158 = vector.extract_strided_slice %108 {offsets = [0, 2], sizes = [32, 1], strides = [1, 1]} : vector<32x3xf32> to vector<32x1xf32>
      %c0_54 = arith.constant 0 : index
      %c4 = arith.constant 4 : index
      %159 = vector.load %arg6[%c0_54, %c4] : memref<32x19xf32, #tpu.memory_space<vmem>>, vector<32x15xf32>
      %160 = vector.broadcast %158 : vector<32x1xf32> to vector<32x15xf32>
      %161 = arith.mulf %160, %159 : vector<32x15xf32>
      %162 = arith.addf %157, %161 : vector<32x15xf32>
      %cst_55 = arith.constant 0.000000e+00 : f32
      %163 = vector.broadcast %cst_55 : f32 to vector<32x15xf32>
      %164 = arith.cmpf oge, %162, %163 : vector<32x15xf32>
      %165 = vector.broadcast %114 : vector<32x1xf32> to vector<32x15xf32>
      %166 = arith.mulf %165, %162 : vector<32x15xf32>
      %167 = arith.select %164, %162, %166 : vector<32x15xi1>, vector<32x15xf32>
      %168 = vector.shape_cast %167 : vector<32x15xf32> to vector<1x32x15xf32>
      %cst_56 = arith.constant dense<0.000000e+00> : vector<1xf32>
      %169 = vector.multi_reduction <add>, %168, %cst_56 [1, 2] : vector<1x32x15xf32> to vector<1xf32>
      %170 = vector.shape_cast %169 : vector<1xf32> to vector<1x1x1xf32>
      %171 = vector.extract %170[0, 0, 0] : f32 from vector<1x1x1xf32>
      %cst_57 = arith.constant 0.00208333344 : f32
      %172 = arith.mulf %171, %cst_57 : f32
      %173 = arith.mulf %167, %167 : vector<32x15xf32>
      %174 = vector.shape_cast %173 : vector<32x15xf32> to vector<1x32x15xf32>
      %cst_58 = arith.constant dense<0.000000e+00> : vector<1xf32>
      %175 = vector.multi_reduction <add>, %174, %cst_58 [1, 2] : vector<1x32x15xf32> to vector<1xf32>
      %176 = vector.shape_cast %175 : vector<1xf32> to vector<1x1x1xf32>
      %177 = vector.extract %176[0, 0, 0] : f32 from vector<1x1x1xf32>
      %cst_59 = arith.constant 0.00208333344 : f32
      %178 = arith.mulf %177, %cst_59 : f32
      %179 = arith.mulf %172, %172 : f32
      %180 = arith.subf %178, %179 : f32
      %181 = vector.broadcast %172 : f32 to vector<32x15xf32>
      %182 = arith.subf %167, %181 : vector<32x15xf32>
      %183 = vector.broadcast %111 : vector<32x1xf32> to vector<32x15xf32>
      %184 = arith.mulf %183, %182 : vector<32x15xf32>
      %cst_60 = arith.constant 9.99999993E-9 : f32
      %185 = arith.addf %180, %cst_60 : f32
      %186 = math.rsqrt %185 : f32
      %187 = vector.broadcast %186 : f32 to vector<32x15xf32>
      %188 = arith.mulf %184, %187 : vector<32x15xf32>
      %189 = vector.broadcast %112 : vector<32x1xf32> to vector<32x15xf32>
      %190 = arith.addf %188, %189 : vector<32x15xf32>
      %191 = arith.index_cast %104 : i32 to index
      %c0_61 = arith.constant 0 : index
      %c0_62 = arith.constant 0 : index
      %192 = vector.load %arg2[%191, %c0_61, %c0_62] : memref<4x16x32xbf16, #tpu.memory_space<vmem>>, vector<1x16x32xbf16>
      %193 = vector.shape_cast %192 : vector<1x16x32xbf16> to vector<16x32xbf16>
      %194 = arith.truncf %190 : vector<32x15xf32> to vector<32x15xbf16>
      %cst_63 = arith.constant dense<0.000000e+00> : vector<16x15xf32>
      %195 = tpu.matmul %193, %194, %cst_63 {dimension_numbers = #tpu.dot_dimension_numbers<[1], [0], [0], [1], [0, 0, 1, 1], [], []>} : vector<16x32xbf16>, vector<32x15xbf16>, vector<16x15xf32> -> vector<16x15xf32>
      %196 = arith.addf %102, %195 : vector<16x15xf32>
      scf.yield %196 : vector<16x15xf32>
    }
    %c2_i32_4 = arith.constant 2 : i32
    %c0_5 = arith.constant 0 : index
    %c0_6 = arith.constant 0 : index
    %c0_7 = arith.constant 0 : index
    %6 = vector.load %arg5[%c0_5, %c0_6, %c0_7] : memref<1x16x15xf32, #tpu.memory_space<vmem>>, vector<1x16x15xf32>
    %7 = vector.shape_cast %6 : vector<1x16x15xf32> to vector<16x15xf32>
    %8 = vector.shape_cast %5 : vector<16x15xf32> to vector<1x16x15xf32>
    tpu.vector_store %arg5[%c0_5, %c0_6, %c0_7], %8 {strides = array<i32>} : memref<1x16x15xf32, #tpu.memory_space<vmem>>, vector<1x16x15xf32>,
    return
  }
  func.func @transform_0(%arg0: i32) -> (i32, i32, i32) {
    %c0_i32 = arith.constant 0 : i32
    %c0_i32_0 = arith.constant 0 : i32
    %c0_i32_1 = arith.constant 0 : i32
    %c0_i32_2 = arith.constant 0 : i32
    return %c0_i32, %c0_i32_0, %c0_i32_1 : i32, i32, i32
  }
  func.func @transform_1(%arg0: i32) -> (i32, i32, i32) {
    %c0_i32 = arith.constant 0 : i32
    %c0_i32_0 = arith.constant 0 : i32
    %c0_i32_1 = arith.constant 0 : i32
    %c0_i32_2 = arith.constant 0 : i32
    return %c0_i32, %c0_i32_0, %c0_i32_1 : i32, i32, i32
  }
  func.func @transform_2(%arg0: i32) -> (i32, i32, i32) {
    %c0_i32 = arith.constant 0 : i32
    %c0_i32_0 = arith.constant 0 : i32
    %c0_i32_1 = arith.constant 0 : i32
    %c0_i32_2 = arith.constant 0 : i32
    return %c0_i32, %c0_i32_0, %c0_i32_1 : i32, i32, i32
  }
  func.func @transform_3(%arg0: i32) -> (i32, i32, i32) {
    %c0_i32 = arith.constant 0 : i32
    %c0_i32_0 = arith.constant 0 : i32
    %c0_i32_1 = arith.constant 0 : i32
    return %arg0, %c0_i32, %c0_i32_0 : i32, i32, i32
  }
  func.func @transform_4(%arg0: i32) -> (i32, i32, i32) {
    %c0_i32 = arith.constant 0 : i32
    %c0_i32_0 = arith.constant 0 : i32
    %c0_i32_1 = arith.constant 0 : i32
    return %arg0, %c0_i32, %c0_i32_0 : i32, i32, i32
  }
}

</mosaic_0001>

<bundles_post_ra>
// kernel: _lambda_.5
= control target key start
LH: loop header
LB: loop body
LE: loop exit
PB: predicated region body
PF: predicated region fallthrough
CT: control target
= control target key end

     0   :  { %s546_s15 = smov 0   ;;  %s586_s0 = inlined_call_operand.vmem [shape: bf16[32,16], index: 0, kind: input, shape index: {}]   ;;  %s587_s1 = inlined_call_operand.vmem [shape: bf16[8,16], index: 1, kind: input, shape index: {}]   ;;  %s588_s2 = inlined_call_operand.vmem [shape: f32[2,16,15], index: 2, kind: input, shape index: {}]   ;;  %s589_s3 = inlined_call_operand.vmem [shape: f32[2,16,15], index: 3, kind: input, shape index: {}]   ;;  %s590_s4 = inlined_call_operand.vmem [shape: f32[2,2,4,16], index: 4, kind: output, shape index: {}]  }
   0x1 LB: > { %s447_s16 = sadd.s32 4294967295, %s513_s15   ;;  %p451_p0 = scmp.ge.s32.totalorder %s513_s15, 1  ;;  %s513_s15 = sphi %s546_s15, %s14_s15  }
   0x2   : > { %p172_p1 = scmp.lt.s32.totalorder %s513_s15, 3 }
   0x4   : > { %p173_p2 = pnand %p451_p0, %p172_p1 }
   0x5   : > { %p203_p3 = scmp.lt.s32.totalorder (!%p173_p2), %s447_s16, 1  ;;  %v505_v0 = vld [vmem:[%s586_s0] sm:$0xff] (!%p173_p2)   ;;  %vm236_vm0 = vcmask (!%p173_p2), 130048   ;;  %v506_v4 = vld [vmem:[%s586_s0 + $0x8] sm:$0xff] (!%p173_p2)   ;;  %v515_v5 = vmov (!%p173_p2), 0.0   ;;  %vm516_vm1 = vmmov (!%p173_p2), 0  }
   0x6   : > { %176 = sbr.rel (%p173_p2) target bundleno = 701 (0x2bd), region = 36  ;;  %476 = vmatprep.mubr.msk.bf16.mxu0 (!%p173_p2), %vm236_vm0, %v505_v0  ;;  %480 = vmatprep.subr.bf16.mxu1 (!%p173_p2), %v515_v5  ;;  %s517_s28 = smov (!%p173_p2), 15   ;;  %vm310_vm2 = vcmask (!%p173_p2), 121856   ;;  %v313_v27 = vld [vmem:[%s587_s1] sm:$0xf] (!%p173_p2)  ;;  %vm364_vm3 = vcmask (!%p173_p2), 7168  }
   0x7   : > { %482 = vmatprep.mubr.msk.bf16.mxu1 (!%p173_p2), %vm516_vm1, %v515_v5  ;;  %s518_s5 = smov (!%p173_p2), 113   ;;  %s519_s6 = smov (!%p173_p2), 1   ;;  %vm367_vm4 = vcmask (!%p173_p2), 125952  }
   0x8   : > { %s520_s7 = smov (!%p173_p2), 114  }
   0xd   : > { %s592_s16 = smov (!%p203_p3, %s447_s16), 1 }
   0xe   : > { %s466_s19 = sshll.u32 %s592_s16, 4  ;;  %s468_s8 = sshll.u32 %s592_s16, 3 }
   0xf   : > { %s212_s22 = scalar_lea.vmem %s589_s3, %s466_s19  ;;  %s207_s27 = scalar_lea.vmem %s588_s2, %s466_s19 }
  0x10   : > { %v219_v1 = vld [vmem:[%s212_s22] sm:$0xff]  ;;  %v220_v2 = vld [vmem:[%s212_s22 + $0x8] sm:$0xff]  ;;  %s217_s11 = scalar_lea.vmem %s590_s4, %s468_s8 }
  0x11   : > { %v221_v3 = vpack.c.bf16 %v220_v2, %v219_v1  ;;  %v296_v7 = vld [vmem:[%s207_s27] sm:$0xff]  ;;  %v297_v12 = vld [vmem:[%s207_s27 + $0x8] sm:$0xff] }
  0x13   : > { %474 = vmatprep.subr.bf16.mxu0 %v221_v3 }
  0x14   : > { %475 = vmatpush3.bf16.msra.mxu0 %v221_v3 }
  0x17   : > { %477 = vmatmul.mubr.msk.bf16.vlgmr.msra.gmra.mrb[0].mxu0 %vm236_vm0, %v506_v4 }
  0xea   : > { %v478_v6 = vpop.f32.mrb[0].mxu0 }
  0xeb   : > { %v294_v8 = vmax.f32 %v478_v6, 0.0  ;;  %v277_v9 = vpop.f32.mrb[1].mxu0 }
  0xec   : > { %v292_v10 = vmax.f32 %v277_v9, 0.0  ;;  %v479_v11 = vpop.f32.mrb[2].mxu0 }
  0xed   : > { %v300_v13 = vmul.f32 %v296_v7, %v294_v8  ;;  %v295_v14 = vmax.f32 %v479_v11, 0.0  ;;  %v280_v15 = vpop.f32.mrb[3].mxu0 }
  0xee   : > { %v298_v16 = vmul.f32 %v296_v7, %v292_v10  ;;  %v293_v17 = vmax.f32 %v280_v15, 0.0 }
  0xef   : > { %v301_v18 = vmul.f32 %v297_v12, %v295_v14 }
  0xf0   : > { %v299_v19 = vmul.f32 %v297_v12, %v293_v17 }
  0xf1   : > { %v500_v20 = vpack.i.bf16 %v301_v18, %v300_v13 }
  0xf3   : > { %501 = vrot.lane.b32.xlu0 %v500_v20, %s517_s28 }
 0x165   : > { %v502_v21 = vpop.permute.xlu0 %501 }
 0x166   : > { %v504_v22 = vunpack.i.h.bf16 %v502_v21  ;;  %v503_v23 = vunpack.i.l.bf16 %v502_v21 }
 0x168   : > { %v311_v24 = vsel %vm310_vm2, %v298_v16, %v503_v23  ;;  %v312_v25 = vsel %vm310_vm2, %v299_v19, %v504_v22 }
 0x169   : > { %v314_v26 = vpack.c.bf16 %v312_v25, %v311_v24 }
 0x16b   : > { %481 = vmatpush3.bf16.msra.mxu1 %v314_v26 }
 0x16e   : > { %483 = vmatmul.mubr.msk.bf16.vlgmr.msra.gmra.mrb[0].mxu1 %vm236_vm0, %v313_v27 }
 0x241   : > { %v352_v28 = vpop.f32.mrb[0].mxu1 }
 0x242   : > { %v360_v29 = vrot.slane %v352_v28, 4  ;;  %369 = vrot.lane.b32.xlu1 %v352_v28, %s518_s5  ;;  %v484_v30 = vpop.f32.mrb[1].mxu1  ;;  %v358_v35 = vsel %vm310_vm2, %v352_v28, 0.0 }
 0x243   : > { %v355_v31 = vpop.f32.mrb[2].mxu1 }
 0x244   : > { %361 = vrot.lane.b32.xlu0 %v360_v29, %s519_s6  ;;  %v485_v32 = vpop.f32.mrb[3].mxu1 }
 0x246   : > { %373 = vrot.lane.b32.xlu1 %v360_v29, %s520_s7 }
 0x2b4   : > { %v370_v33 = vpop.permute.xlu1 %369 }
 0x2b5   : > { %v372_v39 = vsel %vm310_vm2, %v370_v33, 0.0 }
 0x2b6   : > { %v362_v34 = vpop.permute.xlu0 %361 }
 0x2b7   : > { %v365_v36 = vsel %vm364_vm3, 0.0, %v362_v34 }
 0x2b8   : > { %v366_v37 = vadd.f32 %v365_v36, %v358_v35  ;;  %v374_v38 = vpop.permute.xlu1 %373 }
 0x2b9   : > { %v376_v40 = vsel %vm364_vm3, 0.0, %v374_v38 }
 0x2ba   : > { %368 = vst.msk [vmem:[%s217_s11] sm:$0xf] %vm367_vm4, %v366_v37  ;;  %v377_v41 = vadd.f32 %v376_v40, %v372_v39 }
 0x2bc   : > { %463 = vst.msk [vmem:[%s217_s11 + $0x4] sm:$0xf] %vm367_vm4, %v377_v41 }
 0x2bd PF: > { %s14_s15 = sadd.s32 1, %s513_s15  }
 0x2be   : > { %p11_p4 = scmp.ge.s32.totalorder %s14_s15, 4  }
 0x2c0   :  { %13 = sbr.rel (!%p11_p4) target bundleno = 1 (0x1), region = 70 }

// kernel: _lambda_.3
= control target key start
LH: loop header
LB: loop body
LE: loop exit
PB: predicated region body
PF: predicated region fallthrough
CT: control target
= control target key end

     0   :  { %s661_s18 = smov 0   ;;  %s709_s0 = inlined_call_operand.vmem [shape: bf16[16,8], index: 0, kind: input, shape index: {}]   ;;  %s710_s1 = inlined_call_operand.vmem [shape: f32[16,2], index: 1, kind: input, shape index: {}]   ;;  %s711_s2 = inlined_call_operand.vmem [shape: bf16[16,16], index: 2, kind: input, shape index: {}]   ;;  %s712_s3 = inlined_call_operand.vmem [shape: f32[2,4,16], index: 3, kind: input, shape index: {}]   ;;  %s713_s4 = inlined_call_operand.vmem [shape: f32[2,16,15], index: 4, kind: output, shape index: {0}]   ;;  %s714_s5 = inlined_call_operand.vmem [shape: f32[2,16,15], index: 5, kind: output, shape index: {1}]  }
   0x1 LB: > { %s552_s19 = sadd.s32 4294967295, %s623_s18   ;;  %p556_p0 = scmp.ge.s32.totalorder %s623_s18, 1  ;;  %s623_s18 = sphi %s661_s18, %s16_s18  }
   0x2   : > { %p189_p1 = scmp.lt.s32.totalorder %s623_s18, 3 }
   0x4   : > { %p190_p2 = pnand %p556_p0, %p189_p1 }
   0x5   : > { %v613_v0 = vld [vmem:[%s709_s0] sm:$0xff] (!%p190_p2)   ;;  %p221_p3 = scmp.lt.s32.totalorder (!%p190_p2), %s552_s19, 1  ;;  %s625_s22 = smov (!%p190_p2), 124   ;;  %v626_v1 = vmov (!%p190_p2), 0.0   ;;  %vm627_vm0 = vmmov (!%p190_p2), 0   ;;  %vm249_vm1 = vcmask (!%p190_p2), 1041408  }
   0x6   : > { %193 = sbr.rel (%p190_p2) target bundleno = 712 (0x2c8), region = 36  ;;  %294 = vrot.lane.b32.xlu0 (!%p190_p2), %v613_v0, %s625_s22  ;;  %583 = vmatprep.subr.bf16.mxu1 (!%p190_p2), %v626_v1  ;;  %vm245_vm2 = vcmask (!%p190_p2), 31744   ;;  %v628_v6 = vmov (!%p190_p2), 0   ;;  %s629_s27 = smov (!%p190_p2), 127   ;;  %v380_v14 = vld [vmem:[%s710_s1 + $0x8] sm:$0xff] (!%p190_p2)  ;;  %v379_v16 = vld [vmem:[%s710_s1] sm:$0xff] (!%p190_p2) }
   0x7   : > { %585 = vmatprep.mubr.msk.bf16.mxu1 (!%p190_p2), %vm627_vm0, %v626_v1  ;;  %577 = vmatprep.subr.bf16.mxu0 (!%p190_p2), %v626_v1  ;;  %v630_v17 = vmov (!%p190_p2), 1   ;;  %vm352_vm3 = vcmask (!%p190_p2), 121856   ;;  %v614_v63 = vld [vmem:[%s711_s2] sm:$0xff] (!%p190_p2)   ;;  %vm417_vm4 = vcmask (!%p190_p2), 130048  }
   0x8   : > { %579 = vmatprep.mubr.msk.bf16.mxu0 (!%p190_p2), %vm627_vm0, %v626_v1  ;;  %610 = vset.pattern.permute.xlu0 (!%p190_p2), %v628_v6 }
   0x9   : > { %609 = vset.pattern.permute.xlu1 (!%p190_p2), %v628_v6 }
   0xd   : > { %s716_s19 = smov (!%p221_p3, %s552_s19), 1 }
   0xe   : > { %s557_s23 = sshll.u32 %s716_s19, 2  ;;  %s569_s7 = sshll.u32 %s716_s19, 4 }
   0xf   : > { %s224_s26 = scalar_lea.vmem %s712_s3, %s557_s23  ;;  %s229_s10 = scalar_lea.vmem %s713_s4, %s569_s7 }
  0x10   : > { %v236_v2 = vld [vmem:[%s224_s26] sm:$0xf]  ;;  %s234_s15 = scalar_lea.vmem %s714_s5, %s569_s7 }
  0x11   : > { %v237_v3 = vpack.c.bf16 %v236_v2, %v236_v2 }
  0x13   : > { %v251_v4 = vsel %vm249_vm1, %v237_v3, 0 }
  0x14   : > { %584 = vmatpush3.bf16.msra.mxu1 %v251_v4  ;;  %578 = vmatpush3.bf16.msra.mxu0 %v251_v4 }
  0x15   : > { %589 = vmatprep.subr.bf16.mxu0 %v626_v1 }
  0x17   : > { %580 = vmatmul.mubr.msk.bf16.vlgmr.msra.gmra.mrb[0].mxu0 %vm245_vm2, %v613_v0 }
  0x18   : > { %591 = vmatprep.mubr.msk.bf16.mxu0 %vm627_vm0, %v626_v1 }
  0x78   : > { %v295_v5 = vpop.permute.xlu0 %294 }
  0x79   : > { %586 = vmatmul.mubr.msk.bf16.vlgmr.msra.gmra.mrb[0].mxu1 %vm245_vm2, %v295_v5 }
  0xea   : > { %v287_v7 = vpop.f32.mrb[0].mxu0 }
  0xeb   : > { %v581_v8 = vpop.f32.mrb[1].mxu0 }
  0xec   : > { %v290_v9 = vpop.f32.mrb[2].mxu0 }
  0xed   : > { %v582_v10 = vpop.f32.mrb[3].mxu0 }
 0x14c   : > { %v333_v11 = vpop.f32.mrb[0].mxu1 }
 0x14d   : > { %342 = vrot.lane.b32.xlu0 %v333_v11, %s629_s27  ;;  %v587_v12 = vpop.f32.mrb[1].mxu1 }
 0x14e   : > { %v336_v13 = vpop.f32.mrb[2].mxu1 }
 0x14f   : > { %344 = vrot.lane.b32.xlu1 %v336_v13, %s629_s27  ;;  %v588_v15 = vpop.f32.mrb[3].mxu1 }
 0x151   : > { %390 = vperm.xlu0 %610, %v380_v14  }
 0x153   : > { %385 = vperm.xlu1 %609, %v379_v16  }
 0x155   : > { %612 = vset.pattern.permute.xlu0 %v630_v17 }
 0x157   : > { %611 = vset.pattern.permute.xlu1 %v630_v17 }
 0x158   : > { %400 = vperm.xlu1 %611, %v379_v16  }
 0x15c   : > { %404 = vperm.xlu1 %611, %v380_v14  }
 0x1bf   : > { %v343_v18 = vpop.permute.xlu0 %342 }
 0x1c0   : > { %v348_v19 = vadd.f32 %v343_v18, %v287_v7 }
 0x1c1   : > { %v345_v20 = vpop.permute.xlu1 %344 }
 0x1c2   : > { %v350_v21 = vmax.f32 %v348_v19, 0.0  ;;  %v349_v22 = vadd.f32 %v345_v20, %v290_v9 }
 0x1c4   : > { %v365_v23 = vmul.f32 %v350_v21, %v350_v21  ;;  %v351_v24 = vmax.f32 %v349_v22, 0.0  ;;  %353 = vst.msk [vmem:[%s229_s10] sm:$0xff] %vm352_vm3, %v350_v21  ;;  %v355_v25 = vsel %vm352_vm3, %v350_v21, 0.0 }
 0x1c6   : > { %v356_v26 = vsel %vm352_vm3, %v351_v24, 0.0  ;;  %v366_v27 = vmul.f32 %v351_v24, %v351_v24  ;;  %354 = vst.msk [vmem:[%s229_s10 + $0x8] sm:$0xff] %vm352_vm3, %v351_v24  ;;  %v367_v29 = vsel %vm352_vm3, %v365_v23, 0.0 }
 0x1c7   : > { %v357_v28 = vadd.f32 %v356_v26, %v355_v25 }
 0x1c8   : > { %v368_v30 = vsel %vm352_vm3, %v366_v27, 0.0 }
 0x1c9   : > { %v358_v31 = vrot.slane %v357_v28, 4  ;;  %v369_v32 = vadd.f32 %v368_v30, %v367_v29 }
 0x1cb   : > { %v370_v33 = vrot.slane %v369_v32, 4  ;;  %v359_v34 = vadd.f32 %v358_v31, %v357_v28 }
 0x1cd   : > { %v371_v35 = vadd.f32 %v370_v33, %v369_v32  ;;  %v360_v36 = vrot.slane %v359_v34, 2 }
 0x1cf   : > { %v372_v37 = vrot.slane %v371_v35, 2  ;;  %v361_v38 = vadd.f32 %v360_v36, %v359_v34 }
 0x1d0   : > { %v391_v52 = vpop.permute.xlu0 %390 }
 0x1d1   : > { %v373_v39 = vadd.f32 %v372_v37, %v371_v35  ;;  %v362_v40 = vrot.slane %v361_v38, 1 }
 0x1d2   : > { %v386_v51 = vpop.permute.xlu1 %385 }
 0x1d3   : > { %v363_v41 = vadd.f32 %v362_v40, %v361_v38  ;;  %v374_v42 = vrot.slane %v373_v39, 1 }
 0x1d5   : > { %v364_v43 = vmul.f32 0.0625, %v363_v41  ;;  %v375_v44 = vadd.f32 %v374_v42, %v373_v39 }
 0x1d7   : > { %v376_v45 = vmul.f32 0.0625, %v375_v44  ;;  %v377_v46 = vmul.f32 %v364_v43, %v364_v43  ;;  %v382_v47 = vsub.f32 %v351_v24, %v364_v43  ;;  %v381_v48 = vsub.f32 %v350_v21, %v364_v43  ;;  %v401_v53 = vpop.permute.xlu1 %400 }
 0x1d9   : > { %v378_v49 = vsub.f32 %v376_v45, %v377_v46  ;;  %v394_v54 = vmul.f32 %v391_v52, %v382_v47  ;;  %v393_v55 = vmul.f32 %v386_v51, %v381_v48 }
 0x1db   : > { %v395_v50 = vadd.f32 1e-08, %v378_v49  ;;  %v405_v59 = vpop.permute.xlu1 %404 }
 0x1dd   : > { %615 = vrsqrt.f32 %v395_v50 }
 0x1e7   : > { %v616_v56 = vpop.eup %615 }
 0x1e8   : > { %v397_v57 = vmul.f32 %v616_v56, %v393_v55  ;;  %v398_v58 = vmul.f32 %v616_v56, %v394_v54 }
 0x1ea   : > { %v407_v60 = vadd.f32 %v401_v53, %v397_v57  ;;  %v408_v61 = vadd.f32 %v405_v59, %v398_v58 }
 0x1ec   : > { %v411_v62 = vpack.c.bf16 %v408_v61, %v407_v60 }
 0x1ee   : > { %590 = vmatpush3.bf16.msra.mxu0 %v411_v62 }
 0x1f1   : > { %592 = vmatmul.mubr.msk.bf16.vlgmr.msra.gmra.mrb[4].mxu0 %vm417_vm4, %v614_v63 }
 0x2c4   : > { %v455_v0 = vpop.f32.mrb[4].mxu0 }
 0x2c5   : > { %462 = vst.msk [vmem:[%s234_s15] sm:$0xff] %vm352_vm3, %v455_v0  ;;  %v593_v1 = vpop.f32.mrb[5].mxu0 }
 0x2c6   : > { %v458_v2 = vpop.f32.mrb[6].mxu0 }
 0x2c7   : > { %463 = vst.msk [vmem:[%s234_s15 + $0x8] sm:$0xff] %vm352_vm3, %v458_v2  ;;  %v594_v3 = vpop.f32.mrb[7].mxu0 }
 0x2c8 PF: > { %s16_s18 = sadd.s32 1, %s623_s18  }
 0x2c9   : > { %p13_p4 = scmp.ge.s32.totalorder %s16_s18, 4  }
 0x2cb   :  { %15 = sbr.rel (!%p13_p4) target bundleno = 1 (0x1), region = 78 }

// kernel: _lambda_.4
= control target key start
LH: loop header
LB: loop body
LE: loop exit
PB: predicated region body
PF: predicated region fallthrough
CT: control target
= control target key end

     0   :  { %s1655_s15 = smov 0   ;;  %s2048_s0 = inlined_call_operand.vmem [shape: bf16[4,32,16], index: 0, kind: input, shape index: {}]   ;;  %s2049_s1 = inlined_call_operand.vmem [shape: bf16[4,16,32], index: 1, kind: input, shape index: {}]   ;;  %s2050_s2 = inlined_call_operand.vmem [shape: f32[4,32,9], index: 2, kind: input, shape index: {}]   ;;  %s2051_s3 = inlined_call_operand.vmem [shape: f32[2,16,15], index: 3, kind: input, shape index: {}]   ;;  %s2052_s4 = inlined_call_operand.vmem [shape: f32[2,16,15], index: 4, kind: output, shape index: {}]  }
   0x1 LB: > { %s1365_s16 = sadd.s32 4294967295, %s1600_s15   ;;  %p1369_p0 = scmp.ge.s32.totalorder %s1600_s15, 1  ;;  %s1600_s15 = sphi %s1655_s15, %s14_s15  }
   0x2   : > { %p162_p1 = scmp.lt.s32.totalorder %s1600_s15, 3 }
   0x4   : > { %p163_p2 = pnand %p1369_p0, %p162_p1 }
   0x5   : > { %p188_p3 = scmp.lt.s32.totalorder (!%p163_p2), %s1365_s16, 1  ;;  %vm199_vm0 = vcmask (!%p163_p2), 154624   ;;  %v1614_v0 = vmov (!%p163_p2), 0.0   ;;  %s1675_s24 = smov (!%p163_p2), 0  }
   0x6   : > { %166 = sbr.rel (%p163_p2) target bundleno = 2833 (0xb11), region = 36  ;;  %200 = vst.msk [vmem:[#allocation2] sm:$0xff] (!%p163_p2), %vm199_vm0, %v1614_v0  ;;  %201 = vst.msk [vmem:[#allocation2 + $0x8] sm:$0xff] (!%p163_p2), %vm199_vm0, %v1614_v0 }
   0x7   : > { %202 = vst.msk [vmem:[#allocation2 + $0x10] sm:$0xff] (!%p163_p2), %vm199_vm0, %v1614_v0  ;;  %203 = vst.msk [vmem:[#allocation2 + $0x18] sm:$0xff] (!%p163_p2), %vm199_vm0, %v1614_v0 }
   0xd   : > { %s2056_s16 = smov (!%p188_p3, %s1365_s16), 1 }
   0xe   : > { %s1410_s17 = sshll.u32 %s2056_s16, 4 }
   0xf   : > { %s192_s20 = scalar_lea.vmem %s2051_s3, %s1410_s17  ;;  %s1669_s23 = scalar_lea.vmem %s2052_s4, %s1410_s17 }
  0x10   : > { %v204_v1 = vld [vmem:[%s192_s20] sm:$0xff]   ;;  %v205_v2 = vld [vmem:[%s192_s20 + $0x8] sm:$0xff]  }
  0x11 LB: >> { %v1615_v3 = vmov 7   ;;  %v228_v4 = vpack.c.bf16 %v1604_v2, %v1608_v1  ;;  %s1412_s25 = sshll.u32 %s1612_s24, 6  ;;  %s1414_s26 = sshll.u32 %s1612_s24, 5  ;;  %vm239_vm1 = vcmask 130048   ;;  %v1616_v11 = vmov 3   ;;  %s1612_s24 = sphi %s1675_s24, %s211_s24   ;;  %v1608_v1 = vphi %v204_v1, %v2054_v1   ;;  %v1604_v2 = vphi %v205_v2, %v2053_v2  }
  0x12   : >> { %1532 = vset.pattern.permute.xlu0 %v1615_v3  ;;  %1533 = vset.pattern.permute.xlu1 %v1615_v3  ;;  %s1695_s29 = scalar_lea.vmem %s2050_s2, %s1412_s25  ;;  %s1700_s6 = scalar_lea.vmem %s2048_s0, %s1414_s26  ;;  %vm327_vm4 = vcmask 121856   ;;  %v1617_v46 = vmov 4   ;;  %v1618_v47 = vmov 1   ;;  %v1619_v48 = vmov 2  }
  0x13   : >> { %1432 = vmatprep.subr.bf16.mxu0 %v228_v4  ;;  %v1568_v5 = vld [vmem:[%s1700_s6] sm:$0xff]   ;;  %v1569_v6 = vld [vmem:[%s1700_s6 + $0x8] sm:$0xff]   ;;  %v1709_v8 = vld [vmem:[%s1695_s29 + $0x10] sm:$0xff]  ;;  %s1620_s16 = smov 2   ;;  %vm438_vm7 = vcmask 138256   ;;  %s1623_s17 = smov 127  }
  0x14   : >> { %1433 = vmatpush3.bf16.msra.mxu0 %v228_v4  ;;  %1434 = vmatprep.mubr.msk.bf16.mxu0 %vm239_vm1, %v1568_v5  ;;  %v1706_v7 = vld [vmem:[%s1695_s29] sm:$0xff]  ;;  %v1714_v9 = vld [vmem:[%s1695_s29 + $0x8] sm:$0xff]  ;;  %v1718_v10 = vld [vmem:[%s1695_s29 + $0x18] sm:$0xff]  ;;  %s1624_s18 = smov 126   ;;  %s1416_s28 = sshll.u32 %s1612_s24, 4  ;;  %vm1628_vm12 = vmmov 0  }
  0x15   : >> { %301 = vperm.xlu0 %1532, %v1706_v7   ;;  %311 = vperm.xlu1 %1533, %v1709_v8   ;;  %vm721_vm13 = vcmask 261120   ;;  %s211_s24 = sadd.s32 1, %s1612_s24  }
  0x16   : >> { %p208_p4 = scmp.ge.s32.totalorder %s211_s24, 2  }
  0x17   : >> { %1435 = vmatmul.mubr.msk.bf16.vlgmr.msra.gmra.mrb[0].mxu0 %vm239_vm1, %v1569_v6 }
  0x19   : >> { %306 = vperm.xlu0 %1532, %v1714_v9   ;;  %316 = vperm.xlu1 %1533, %v1718_v10  }
  0x1d   : >> { %1535 = vset.pattern.permute.xlu1 %v1616_v11  ;;  %1534 = vset.pattern.permute.xlu0 %v1616_v11 }
  0x94   : >> { %v312_v12 = vpop.permute.xlu1 %311  ;;  %v302_v13 = vpop.permute.xlu0 %301 }
  0x98   : >> { %v317_v15 = vpop.permute.xlu1 %316  ;;  %v307_v20 = vpop.permute.xlu0 %306 }
  0xea   : >> { %v1436_v14 = vpop.f32.mrb[0].mxu0 }
  0xeb   : >> { %vm297_vm2 = vcmp.ge.f32.partialorder %v1436_v14, 0.0  ;;  %v321_v16 = vmul.f32 %v1436_v14, %v312_v12  ;;  %v280_v17 = vpop.f32.mrb[1].mxu0 }
  0xec   : >> { %vm295_vm3 = vcmp.ge.f32.partialorder %v280_v17, 0.0  ;;  %v319_v18 = vmul.f32 %v302_v13, %v280_v17  ;;  %v1437_v19 = vpop.f32.mrb[2].mxu0 }
  0xed   : >> { %vm298_vm5 = vcmp.ge.f32.partialorder %v1437_v19, 0.0  ;;  %v322_v21 = vmul.f32 %v1437_v19, %v317_v15  ;;  %v283_v22 = vpop.f32.mrb[3].mxu0  ;;  %v1724_v23 = vsel %vm297_vm2, %v1436_v14, %v321_v16 }
  0xee   : >> { %v1726_v24 = vsel %vm295_vm3, %v280_v17, %v319_v18  ;;  %vm296_vm6 = vcmp.ge.f32.partialorder %v283_v22, 0.0  ;;  %v320_v25 = vmul.f32 %v307_v20, %v283_v22  ;;  %v347_v29 = vmul.f32 %v1724_v23, %v1724_v23 }
  0xef   : >> { %v345_v26 = vmul.f32 %v1726_v24, %v1726_v24  ;;  %v1730_v27 = vsel %vm298_vm5, %v1437_v19, %v322_v21  ;;  %v328_v30 = vsel %vm327_vm4, %v1726_v24, 0.0  ;;  %v331_v34 = vsel %vm327_vm4, %v1724_v23, 0.0 }
  0xf0   : >> { %v1732_v28 = vsel %vm296_vm6, %v283_v22, %v320_v25  ;;  %v348_v35 = vmul.f32 %v1730_v27, %v1730_v27  ;;  %v333_v40 = vsel %vm327_vm4, %v1730_v27, 0.0  ;;  %v352_v41 = vsel %vm327_vm4, %v347_v29, 0.0 }
  0xf1   : >> { %v329_v31 = vsel %vm327_vm4, %v1732_v28, 0.0  ;;  %v346_v32 = vmul.f32 %v1732_v28, %v1732_v28  ;;  %v349_v36 = vsel %vm327_vm4, %v345_v26, 0.0 }
  0xf2   : >> { %v330_v33 = vadd.f32 %v329_v31, %v328_v30  ;;  %v354_v44 = vsel %vm327_vm4, %v348_v35, 0.0  ;;  %v1621_v35 = vmov 0  }
  0xf3   : >> { %v350_v37 = vsel %vm327_vm4, %v346_v32, 0.0 }
  0xf4   : >> { %v332_v38 = vadd.f32 %v331_v34, %v330_v33  ;;  %v351_v39 = vadd.f32 %v350_v37, %v349_v36  ;;  %v1622_v36 = vmov 8  }
  0xf6   : >> { %v334_v42 = vadd.f32 %v333_v40, %v332_v38  ;;  %v353_v43 = vadd.f32 %v352_v41, %v351_v39 }
  0xf8   : >> { %335 = vadd.xlane.f32.xlu0 %v334_v42  ;;  %v355_v45 = vadd.f32 %v354_v44, %v353_v43 }
  0xfa   : >> { %356 = vadd.xlane.f32.xlu1 %v355_v45 }
 0x10b   : >> { %378 = vperm.xlu1 %1535, %v1714_v9  }
 0x10e   : >> { %374 = vperm.xlu0 %1534, %v1706_v7  }
 0x10f   : >> { %382 = vperm.xlu1 %1535, %v1709_v8  }
 0x112   : >> { %1537 = vset.pattern.permute.xlu0 %v1618_v47 }
 0x113   : >> { %386 = vperm.xlu1 %1535, %v1718_v10   ;;  %468 = vperm.xlu0 %1537, %v1706_v7  }
 0x117   : >> { %1536 = vset.pattern.permute.xlu1 %v1617_v46  ;;  %476 = vperm.xlu0 %1537, %v1709_v8  }
 0x118   : >> { %403 = vperm.xlu1 %1536, %v1706_v7  }
 0x11b   : >> { %1540 = vset.pattern.permute.xlu0 %v1619_v48 }
 0x11c   : >> { %407 = vperm.xlu1 %1536, %v1714_v9  }
 0x120   : >> { %411 = vperm.xlu1 %1536, %v1709_v8  }
 0x124   : >> { %415 = vperm.xlu1 %1536, %v1718_v10  }
 0x128   : >> { %1538 = vset.pattern.permute.xlu1 %v1618_v47 }
 0x129   : >> { %472 = vperm.xlu1 %1538, %v1714_v9  }
 0x12d   : >> { %1539 = vset.pattern.permute.xlu1 %v1619_v48 }
 0x12e   : >> { %508 = vperm.xlu1 %1539, %v1706_v7  }
 0x132   : >> { %1541 = vset.pattern.permute.xlu1 %v1618_v47 }
 0x133   : >> { %480 = vperm.xlu1 %1541, %v1718_v10  }
 0x137   : >> { %1542 = vset.pattern.permute.xlu1 %v1619_v48 }
 0x185   : >> { %v336_v49 = vpop.xlane.xlu0 %335 }
 0x186   : >> { %v337_v50 = vrot.slane %v336_v49, 4 }
 0x187   : >> { %v357_v51 = vpop.xlane.xlu1 %356 }
 0x188   : >> { %v338_v52 = vadd.f32 %v337_v50, %v336_v49  ;;  %v358_v53 = vrot.slane %v357_v51, 4 }
 0x18a   : >> { %v339_v54 = vrot.slane %v338_v52, 2  ;;  %v359_v55 = vadd.f32 %v358_v53, %v357_v51 }
 0x18b   : >> { %v379_v4 = vpop.permute.xlu1 %378 }
 0x18c   : >> { %v340_v56 = vadd.f32 %v339_v54, %v338_v52  ;;  %v360_v57 = vrot.slane %v359_v55, 2 }
 0x18d   : >> { %v375_v16 = vpop.permute.xlu0 %374 }
 0x18e   : >> { %v341_v58 = vrot.slane %v340_v56, 1  ;;  %v361_v59 = vadd.f32 %v360_v57, %v359_v55 }
 0x18f   : >> { %v383_v5 = vpop.permute.xlu1 %382 }
 0x190   : >> { %v342_v60 = vadd.f32 %v341_v58, %v340_v56  ;;  %v362_v61 = vrot.slane %v361_v59, 1 }
 0x192   : >> { %1460 = vpush %v342_v60  ;;  %v363_v62 = vadd.f32 %v362_v61, %v361_v59  ;;  %v469_v39 = vpop.permute.xlu0 %468 }
 0x193   : >> { %v387_v6 = vpop.permute.xlu1 %386 }
 0x194   : >> { %1462 = vpush %v363_v62 }
 0x196   : >> { %v477_v41 = vpop.permute.xlu0 %476 }
 0x197   : >> { %v404_v13 = vpop.permute.xlu1 %403 }
 0x19b   : >> { %v408_v18 = vpop.permute.xlu1 %407 }
 0x19f   : >> { %v412_v33 = vpop.permute.xlu1 %411 }
 0x1a3   : >> { %v416_v34 = vpop.permute.xlu1 %415 }
 0x1a8   : >> { %v473_v37 = vpop.permute.xlu1 %472 }
 0x1ad   : >> { %v509_v38 = vpop.permute.xlu1 %508 }
 0x1b2   : >> { %v481_v40 = vpop.permute.xlu1 %480 }
 0x1c3   : >> { %s1461_s7 = spop %1460 }
 0x1c4   : >> { %s344_s8 = smul.f32 0.0020833334, %s1461_s7  ;;  %s1866_s7 = scalar_lea.vmem %s2049_s1, %s1416_s28 }
 0x1c5   : >> { %s1463_s9 = spop %1462 }
 0x1c6   : >> { %s366_s10 = smul.f32 %s344_s8, %s344_s8  ;;  %v368_v12 = vstv %s344_s8 }
 0x1c7   : >> { %s365_s11 = smul.f32 0.0020833334, %s1463_s9  ;;  %v370_v14 = vsub.f32 %v1732_v28, %v368_v12  ;;  %v369_v15 = vsub.f32 %v1726_v24, %v368_v12  ;;  %v371_v17 = vsub.f32 %v1724_v23, %v368_v12  ;;  %v372_v25 = vsub.f32 %v1730_v27, %v368_v12 }
 0x1c9   : >> { %s367_s12 = ssub.f32 %s365_s11, %s366_s10  ;;  %v389_v19 = vmul.f32 %v375_v16, %v369_v15  ;;  %v390_v20 = vmul.f32 %v379_v4, %v370_v14  ;;  %v391_v22 = vmul.f32 %v383_v5, %v371_v17  ;;  %v392_v28 = vmul.f32 %v387_v6, %v372_v25 }
 0x1cb   : >> { %s393_s13 = sadd.f32 1e-08, %s367_s12 }
 0x1cd   : >> { %v394_v63 = vstv %s393_s13 }
 0x1ce   : >> { %1574 = vrsqrt.f32 %v394_v63 }
 0x1d8   : >> { %v1575_v0 = vpop.eup %1574 }
 0x1d9   : >> { %1464 = vpush %v1575_v0 }
 0x20a   : >> { %s1465_s14 = spop %1464 }
 0x20b   : >> { %v397_v21 = vstv %s1465_s14 }
 0x20c   : >> { %v398_v26 = vmul.f32 %v397_v21, %v389_v19  ;;  %v399_v29 = vmul.f32 %v397_v21, %v390_v20  ;;  %v400_v30 = vmul.f32 %v397_v21, %v391_v22  ;;  %v401_v23 = vmul.f32 %v397_v21, %v392_v28 }
 0x20e   : >> { %v419_v31 = vadd.f32 %v408_v18, %v399_v29  ;;  %v418_v32 = vadd.f32 %v404_v13, %v398_v26  ;;  %v420_v24 = vadd.f32 %v412_v33, %v400_v30  ;;  %v421_v27 = vadd.f32 %v416_v34, %v401_v23 }
 0x210   : >> { %428 = vrot.lane.b32.xlu1 %v419_v31, %s1620_s16  ;;  %426 = vrot.lane.b32.xlu0 %v418_v32, %s1620_s16 }
 0x214   : >> { %430 = vrot.lane.b32.xlu1 %v420_v24, %s1620_s16  ;;  %512 = vperm.xlu0 %1540, %v1714_v9  }
 0x218   : >> { %432 = vrot.lane.b32.xlu1 %v421_v27, %s1620_s16  ;;  %516 = vperm.xlu0 %1540, %v1709_v8  }
 0x21c   : >> { %520 = vperm.xlu1 %1542, %v1718_v10   ;;  %1543 = vset.pattern.permute.xlu0 %v1621_v35 }
 0x21d   : >> { %448 = vperm.xlu0 %1543, %v1706_v7  }
 0x220   : >> { %1544 = vset.pattern.permute.xlu1 %v1621_v35 }
 0x221   : >> { %452 = vperm.xlu1 %1544, %v1714_v9   ;;  %460 = vperm.xlu0 %1543, %v1718_v10  }
 0x225   : >> { %456 = vperm.xlu1 %1544, %v1709_v8   ;;  %1546 = vset.pattern.permute.xlu0 %v1622_v36 }
 0x226   : >> { %556 = vperm.xlu0 %1546, %v1714_v9  }
 0x229   : >> { %1545 = vset.pattern.permute.xlu1 %v1622_v36 }
 0x22a   : >> { %552 = vperm.xlu1 %1545, %v1706_v7  }
 0x22e   : >> { %560 = vperm.xlu1 %1545, %v1709_v8  }
 0x232   : >> { %564 = vperm.xlu1 %1545, %v1718_v10  }
 0x282   : >> { %v429_v42 = vpop.permute.xlu1 %428  ;;  %v427_v43 = vpop.permute.xlu0 %426 }
 0x283   : >> { %440 = vst.msk [vmem:[#allocation2 + $0x8] sm:$0xff] %vm438_vm7, %v429_v42  ;;  %439 = vst.msk [vmem:[#allocation2] sm:$0xff] %vm438_vm7, %v427_v43 }
 0x286   : >> { %v431_v44 = vpop.permute.xlu1 %430 }
 0x287   : >> { %441 = vst.msk [vmem:[#allocation2 + $0x10] sm:$0xff] %vm438_vm7, %v431_v44 }
 0x28a   : >> { %v433_v45 = vpop.permute.xlu1 %432  ;;  %v444_v49 = vld [vmem:[#allocation2 + $0x8] sm:$0xff]  ;;  %v443_v50 = vld [vmem:[#allocation2] sm:$0xff] }
 0x28b   : >> { %442 = vst.msk [vmem:[#allocation2 + $0x18] sm:$0xff] %vm438_vm7, %v433_v45  ;;  %v484_v51 = vmul.f32 %v473_v37, %v444_v49  ;;  %v483_v52 = vmul.f32 %v469_v39, %v443_v50  ;;  %v523_v55 = vmul.f32 %v509_v38, %v443_v50 }
 0x28d   : >> { %493 = vrot.lane.b32.xlu0 %v484_v51, %s1623_s17  ;;  %491 = vrot.lane.b32.xlu1 %v483_v52, %s1623_s17 }
 0x28e   : >> { %v445_v53 = vld [vmem:[#allocation2 + $0x10] sm:$0xff] }
 0x28f   : >> { %v485_v54 = vmul.f32 %v477_v41, %v445_v53 }
 0x291   : >> { %495 = vrot.lane.b32.xlu0 %v485_v54, %s1623_s17  ;;  %531 = vrot.lane.b32.xlu1 %v523_v55, %s1624_s18 }
 0x292   : >> { %v446_v56 = vld [vmem:[#allocation2 + $0x18] sm:$0xff] }
 0x293   : >> { %v513_v57 = vpop.permute.xlu0 %512  ;;  %v486_v58 = vmul.f32 %v481_v40, %v446_v56 }
 0x294   : >> { %v524_v59 = vmul.f32 %v513_v57, %v444_v49 }
 0x295   : >> { %497 = vrot.lane.b32.xlu1 %v486_v58, %s1623_s17 }
 0x296   : >> { %533 = vrot.lane.b32.xlu0 %v524_v59, %s1624_s18 }
 0x297   : >> { %v517_v60 = vpop.permute.xlu0 %516 }
 0x298   : >> { %v525_v61 = vmul.f32 %v517_v60, %v445_v53 }
 0x29a   : >> { %535 = vrot.lane.b32.xlu0 %v525_v61, %s1624_s18 }
 0x29b   : >> { %v521_v62 = vpop.permute.xlu1 %520 }
 0x29c   : >> { %v526_v63 = vmul.f32 %v521_v62, %v446_v56  ;;  %v449_v5 = vpop.permute.xlu0 %448 }
 0x29d   : >> { %v463_v18 = vmul.f32 %v449_v5, %v443_v50  ;;  %v1625_v50 = vmov 5  }
 0x29e   : >> { %537 = vrot.lane.b32.xlu1 %v526_v63, %s1624_s18  ;;  %1547 = vset.pattern.permute.xlu0 %v1625_v50 }
 0x29f   : >> { %1548 = vset.pattern.permute.xlu1 %v1625_v50 }
 0x2a0   : >> { %v453_v0 = vpop.permute.xlu1 %452  ;;  %v461_v12 = vpop.permute.xlu0 %460 }
 0x2a1   : >> { %v464_v25 = vmul.f32 %v453_v0, %v444_v49  ;;  %v466_v27 = vmul.f32 %v461_v12, %v446_v56 }
 0x2a4   : >> { %v457_v4 = vpop.permute.xlu1 %456 }
 0x2a5   : >> { %v557_v14 = vpop.permute.xlu0 %556  ;;  %v465_v32 = vmul.f32 %v457_v4, %v445_v53 }
 0x2a9   : >> { %v553_v6 = vpop.permute.xlu1 %552 }
 0x2ad   : >> { %v561_v13 = vpop.permute.xlu1 %560 }
 0x2b1   : >> { %v565_v15 = vpop.permute.xlu1 %564 }
 0x2ff   : >> { %v492_v16 = vpop.permute.xlu1 %491  ;;  %v494_v17 = vpop.permute.xlu0 %493 }
 0x300   : >> { %v503_v19 = vadd.f32 %v492_v16, %v463_v18  ;;  %v504_v29 = vadd.f32 %v494_v17, %v464_v25 }
 0x303   : >> { %v532_v20 = vpop.permute.xlu1 %531  ;;  %v496_v21 = vpop.permute.xlu0 %495 }
 0x304   : >> { %v543_v22 = vadd.f32 %v532_v20, %v503_v19  ;;  %v505_v28 = vadd.f32 %v496_v21, %v465_v32  ;;  %v1626_v20 = vmov 6  }
 0x306   : >> { %vm547_vm8 = vcmp.ge.f32.partialorder %v543_v22, 0.0  ;;  %v567_v26 = vmul.f32 %v553_v6, %v543_v22 }
 0x307   : >> { %v498_v24 = vpop.permute.xlu1 %497 }
 0x308   : >> { %v534_v30 = vpop.permute.xlu0 %533  ;;  %v1807_v31 = vsel %vm547_vm8, %v543_v22, %v567_v26  ;;  %v506_v39 = vadd.f32 %v498_v24, %v466_v27 }
 0x309   : >> { %v544_v33 = vadd.f32 %v534_v30, %v504_v29  ;;  %579 = vrot.lane.b32.xlu0 %v1807_v31, %s1623_s17  ;;  %v608_v51 = vmul.f32 %v1807_v31, %v1807_v31 }
 0x30b   : >> { %v568_v23 = vmul.f32 %v557_v14, %v544_v33  ;;  %vm548_vm9 = vcmp.ge.f32.partialorder %v544_v33, 0.0 }
 0x30c   : >> { %v536_v34 = vpop.permute.xlu0 %535 }
 0x30d   : >> { %v545_v37 = vadd.f32 %v536_v34, %v505_v28  ;;  %v1811_v38 = vsel %vm548_vm9, %v544_v33, %v568_v23 }
 0x30e   : >> { %581 = vrot.lane.b32.xlu1 %v1811_v38, %s1623_s17  ;;  %v609_v45 = vmul.f32 %v1811_v38, %v1811_v38 }
 0x30f   : >> { %v569_v40 = vmul.f32 %v561_v13, %v545_v37  ;;  %vm549_vm10 = vcmp.ge.f32.partialorder %v545_v37, 0.0 }
 0x310   : >> { %v538_v41 = vpop.permute.xlu1 %537 }
 0x311   : >> { %v546_v42 = vadd.f32 %v538_v41, %v506_v39  ;;  %v1815_v43 = vsel %vm549_vm10, %v545_v37, %v569_v40 }
 0x312   : >> { %583 = vrot.lane.b32.xlu0 %v1815_v43, %s1623_s17  ;;  %v610_v52 = vmul.f32 %v1815_v43, %v1815_v43 }
 0x313   : >> { %v570_v44 = vmul.f32 %v565_v15, %v546_v42  ;;  %vm550_vm11 = vcmp.ge.f32.partialorder %v546_v42, 0.0 }
 0x315   : >> { %v1821_v49 = vsel %vm550_vm11, %v546_v42, %v570_v44 }
 0x316   : >> { %585 = vrot.lane.b32.xlu1 %v1821_v49, %s1623_s17  ;;  %618 = vrot.lane.b32.xlu0 %v609_v45, %s1623_s17  ;;  %v611_v53 = vmul.f32 %v1821_v49, %v1821_v49 }
 0x31a   : >> { %616 = vrot.lane.b32.xlu1 %v608_v51, %s1623_s17  ;;  %620 = vrot.lane.b32.xlu0 %v610_v52, %s1623_s17 }
 0x31e   : >> { %622 = vrot.lane.b32.xlu1 %v611_v53, %s1623_s17 }
 0x37b   : >> { %v580_v54 = vpop.permute.xlu0 %579 }
 0x37c   : >> { %v591_v58 = vsel %vm327_vm4, %v580_v54, 0.0 }
 0x380   : >> { %v582_v55 = vpop.permute.xlu1 %581 }
 0x381   : >> { %v592_v56 = vsel %vm327_vm4, %v582_v55, 0.0 }
 0x382   : >> { %v593_v60 = vadd.f32 %v592_v56, %v591_v58 }
 0x384   : >> { %v584_v57 = vpop.permute.xlu0 %583 }
 0x385   : >> { %v594_v59 = vsel %vm327_vm4, %v584_v57, 0.0 }
 0x386   : >> { %v595_v61 = vadd.f32 %v594_v59, %v593_v60 }
 0x388   : >> { %v586_v62 = vpop.permute.xlu1 %585  ;;  %v619_v63 = vpop.permute.xlu0 %618 }
 0x389   : >> { %v596_v0 = vsel %vm327_vm4, %v586_v62, 0.0  ;;  %v629_v12 = vsel %vm327_vm4, %v619_v63, 0.0 }
 0x38a   : >> { %v597_v4 = vadd.f32 %v596_v0, %v595_v61 }
 0x38c   : >> { %v617_v5 = vpop.permute.xlu1 %616  ;;  %598 = vadd.xlane.f32.xlu0 %v597_v4  ;;  %v621_v6 = vpop.permute.xlu0 %620 }
 0x38d   : >> { %v628_v13 = vsel %vm327_vm4, %v617_v5, 0.0  ;;  %v631_v15 = vsel %vm327_vm4, %v621_v6, 0.0 }
 0x38e   : >> { %v630_v14 = vadd.f32 %v629_v12, %v628_v13  ;;  %v1570_v13 = vld [vmem:[%s1866_s7] sm:$0xff]  }
 0x390   : >> { %v632_v16 = vadd.f32 %v631_v15, %v630_v14  ;;  %v623_v17 = vpop.permute.xlu1 %622  ;;  %v1571_v14 = vld [vmem:[%s1700_s6 + $0x10] sm:$0xff]   ;;  %v1881_v15 = vld [vmem:[%s1695_s29 + $0x20] sm:$0xff] }
 0x391   : >> { %v633_v18 = vsel %vm327_vm4, %v623_v17, 0.0  ;;  %1448 = vmatprep.mubr.msk.bf16.mxu0 %vm239_vm1, %v1571_v14  ;;  %v1889_v17 = vld [vmem:[%s1695_s29 + $0x38] sm:$0xff] }
 0x392   : >> { %v634_v19 = vadd.f32 %v633_v18, %v632_v16  ;;  %v1884_v16 = vld [vmem:[%s1695_s29 + $0x28] sm:$0xff]  ;;  %v1892_v18 = vld [vmem:[%s1695_s29 + $0x30] sm:$0xff] }
 0x394   : >> { %635 = vadd.xlane.f32.xlu1 %v634_v19 }
 0x3a2   : >> { %653 = vperm.xlu0 %1547, %v1706_v7  }
 0x3a5   : >> { %657 = vperm.xlu1 %1548, %v1714_v9  }
 0x3a6   : >> { %1550 = vset.pattern.permute.xlu0 %v1626_v20 }
 0x3a7   : >> { %694 = vperm.xlu0 %1550, %v1718_v10  }
 0x3a9   : >> { %661 = vperm.xlu1 %1548, %v1709_v8  }
 0x3ab   : >> { %1551 = vset.pattern.permute.xlu0 %v1615_v3 }
 0x3ac   : >> { %854 = vperm.xlu0 %1551, %v1881_v15  }
 0x3ad   : >> { %665 = vperm.xlu1 %1548, %v1718_v10  }
 0x3b0   : >> { %869 = vperm.xlu0 %1551, %v1889_v17  }
 0x3b1   : >> { %1549 = vset.pattern.permute.xlu1 %v1626_v20 }
 0x3b2   : >> { %682 = vperm.xlu1 %1549, %v1706_v7  }
 0x3b4   : >> { %1553 = vset.pattern.permute.xlu0 %v1616_v11 }
 0x3b6   : >> { %686 = vperm.xlu1 %1549, %v1714_v9   ;;  %v1627_v9 = vmov 0.0  }
 0x3b7   : >> { %1438 = vmatprep.subr.bf16.mxu1 %v1627_v9  ;;  %1442 = vmatprep.mubr.msk.bf16.mxu1 %vm1628_vm12, %v1627_v9 }
 0x3ba   : >> { %690 = vperm.xlu1 %1549, %v1709_v8  }
 0x3be   : >> { %1552 = vset.pattern.permute.xlu1 %v1615_v3 }
 0x419   : >> { %v599_v21 = vpop.xlane.xlu0 %598 }
 0x41a   : >> { %v600_v22 = vrot.slane %v599_v21, 4 }
 0x41c   : >> { %v601_v25 = vadd.f32 %v600_v22, %v599_v21 }
 0x41e   : >> { %v602_v26 = vrot.slane %v601_v25, 2 }
 0x420   : >> { %v603_v29 = vadd.f32 %v602_v26, %v601_v25 }
 0x421   : >> { %v636_v30 = vpop.xlane.xlu1 %635  ;;  %v654_v52 = vpop.permute.xlu0 %653 }
 0x422   : >> { %v637_v32 = vrot.slane %v636_v30, 4  ;;  %v604_v33 = vrot.slane %v603_v29, 1 }
 0x424   : >> { %v638_v28 = vadd.f32 %v637_v32, %v636_v30  ;;  %v605_v10 = vadd.f32 %v604_v33, %v603_v29  ;;  %v1572_v32 = vld [vmem:[%s1700_s6 + $0x18] sm:$0xff]  }
 0x425   : >> { %v658_v27 = vpop.permute.xlu1 %657 }
 0x426   : >> { %v639_v23 = vrot.slane %v638_v28, 2  ;;  %1466 = vpush %v605_v10  ;;  %v695_v59 = vpop.permute.xlu0 %694 }
 0x428   : >> { %v640_v24 = vadd.f32 %v639_v23, %v638_v28 }
 0x429   : >> { %v662_v37 = vpop.permute.xlu1 %661 }
 0x42a   : >> { %v641_v7 = vrot.slane %v640_v24, 1 }
 0x42c   : >> { %v642_v34 = vadd.f32 %v641_v7, %v640_v24 }
 0x42d   : >> { %v666_v39 = vpop.permute.xlu1 %665 }
 0x42e   : >> { %1468 = vpush %v642_v34 }
 0x431   : >> { %v683_v41 = vpop.permute.xlu1 %682 }
 0x435   : >> { %v687_v53 = vpop.permute.xlu1 %686 }
 0x439   : >> { %v691_v62 = vpop.permute.xlu1 %690 }
 0x457   : >> { %s1467_s19 = spop %1466 }
 0x458   : >> { %s607_s20 = smul.f32 0.0020833334, %s1467_s19 }
 0x45a   : >> { %s645_s21 = smul.f32 %s607_s20, %s607_s20  ;;  %v647_v40 = vstv %s607_s20 }
 0x45b   : >> { %v649_v42 = vsub.f32 %v1811_v38, %v647_v40  ;;  %v650_v44 = vsub.f32 %v1815_v43, %v647_v40  ;;  %v651_v45 = vsub.f32 %v1821_v49, %v647_v40  ;;  %v648_v51 = vsub.f32 %v1807_v31, %v647_v40 }
 0x45d   : >> { %v670_v54 = vmul.f32 %v662_v37, %v650_v44  ;;  %v671_v55 = vmul.f32 %v666_v39, %v651_v45  ;;  %v668_v56 = vmul.f32 %v654_v52, %v648_v51  ;;  %v669_v57 = vmul.f32 %v658_v27, %v649_v42 }
 0x45f   : >> { %s1469_s22 = spop %1468 }
 0x460   : >> { %s644_s25 = smul.f32 0.0020833334, %s1469_s22 }
 0x462   : >> { %s646_s26 = ssub.f32 %s644_s25, %s645_s21 }
 0x464   : >> { %s672_s27 = sadd.f32 1e-08, %s646_s26 }
 0x466   : >> { %v673_v3 = vstv %s672_s27 }
 0x467   : >> { %1576 = vrsqrt.f32 %v673_v3 }
 0x471   : >> { %v1577_v8 = vpop.eup %1576 }
 0x472   : >> { %1470 = vpush %v1577_v8 }
 0x4a3   : >> { %s1471_s8 = spop %1470 }
 0x4a4   : >> { %v676_v38 = vstv %s1471_s8 }
 0x4a5   : >> { %v677_v43 = vmul.f32 %v676_v38, %v668_v56  ;;  %v678_v31 = vmul.f32 %v676_v38, %v669_v57  ;;  %v679_v49 = vmul.f32 %v676_v38, %v670_v54  ;;  %v680_v58 = vmul.f32 %v676_v38, %v671_v55 }
 0x4a7   : >> { %v697_v60 = vadd.f32 %v683_v41, %v677_v43  ;;  %v698_v61 = vadd.f32 %v687_v53, %v678_v31  ;;  %v699_v63 = vadd.f32 %v691_v62, %v679_v49  ;;  %v700_v0 = vadd.f32 %v695_v59, %v680_v58 }
 0x4a9   : >> { %v706_v4 = vpack.c.bf16 %v698_v61, %v697_v60  ;;  %v707_v5 = vpack.c.bf16 %v700_v0, %v699_v63 }
 0x4ab   : >> { %715 = vrot.lane.b32.xlu1 %v706_v4, %s1623_s17 }
 0x4af   : >> { %717 = vrot.lane.b32.xlu1 %v707_v5, %s1623_s17 }
 0x4b3   : >> { %859 = vperm.xlu1 %1552, %v1884_v16  }
 0x4b7   : >> { %864 = vperm.xlu1 %1552, %v1892_v18  }
 0x4bb   : >> { %1554 = vset.pattern.permute.xlu1 %v1616_v11  ;;  %v855_v11 = vpop.permute.xlu0 %854 }
 0x4bf   : >> { %v870_v23 = vpop.permute.xlu0 %869 }
 0x51d   : >> { %v716_v6 = vpop.permute.xlu1 %715 }
 0x51e   : >> { %1439 = vmatpush3.bf16.msra.mxu1 %v716_v6 }
 0x51f   : >> { %1440 = vmatprep.subr.bf16.mxu1 %v1627_v9 }
 0x521   : >> { %v718_v12 = vpop.permute.xlu1 %717 }
 0x522   : >> { %1441 = vmatpush3.bf16.msra.mxu1 %v718_v12 }
 0x523   : >> { %1452 = vmatprep.subr.bf16.mxu1 %v1627_v9 }
 0x525   : >> { %1443 = vmatmul.mubr.msk.bf16.vlgmr.msra.gmra.mrb[0].mxu1 %vm721_vm13, %v1570_v13 }
 0x526   : >> { %1456 = vmatprep.mubr.msk.bf16.mxu1 %vm1628_vm12, %v1627_v9 }
 0x532   : >> { %v860_v33 = vpop.permute.xlu1 %859 }
 0x536   : >> { %v865_v28 = vpop.permute.xlu1 %864 }
 0x5f8   : >> { %v759_v19 = vpop.f32.mrb[0].mxu1 }
 0x5f9   : >> { %v1444_v21 = vpop.f32.mrb[1].mxu1  ;;  %v1899_v25 = vadd.f32 %v1608_v1, %v759_v19 }
 0x5fa   : >> { %v762_v22 = vpop.f32.mrb[2].mxu1 }
 0x5fb   : >> { %v1902_v26 = vadd.f32 %v1604_v2, %v762_v22  ;;  %v1445_v29 = vpop.f32.mrb[3].mxu1 }
 0x5fd   : >> { %v782_v30 = vpack.c.bf16 %v1902_v26, %v1899_v25 }
 0x5ff   : >> { %1446 = vmatprep.subr.bf16.mxu0 %v782_v30 }
 0x600   : >> { %1447 = vmatpush3.bf16.msra.mxu0 %v782_v30 }
 0x603   : >> { %1449 = vmatmul.mubr.msk.bf16.vlgmr.msra.gmra.mrb[4].mxu0 %vm239_vm1, %v1572_v32 }
 0x6d6   : >> { %v1450_v10 = vpop.f32.mrb[4].mxu0 }
 0x6d7   : >> { %vm850_vm14 = vcmp.ge.f32.partialorder %v1450_v10, 0.0  ;;  %v833_v1 = vpop.f32.mrb[5].mxu0  ;;  %v874_v24 = vmul.f32 %v1450_v10, %v865_v28 }
 0x6d8   : >> { %vm848_vm15 = vcmp.ge.f32.partialorder %v833_v1, 0.0  ;;  %v872_v2 = vmul.f32 %v855_v11, %v833_v1  ;;  %v1451_v7 = vpop.f32.mrb[6].mxu0 }
 0x6d9   : >> { %vm851_vm0 = vcmp.ge.f32.partialorder %v1451_v7, 0.0  ;;  %v875_v34 = vmul.f32 %v1451_v7, %v870_v23  ;;  %v836_v3 = vpop.f32.mrb[7].mxu0  ;;  %v1910_v27 = vsel %vm850_vm14, %v1450_v10, %v874_v24 }
 0x6da   : >> { %v1908_v8 = vsel %vm848_vm15, %v833_v1, %v872_v2  ;;  %vm849_vm2 = vcmp.ge.f32.partialorder %v836_v3, 0.0  ;;  %v873_v37 = vmul.f32 %v860_v33, %v836_v3  ;;  %v899_v51 = vmul.f32 %v1910_v27, %v1910_v27 }
 0x6db   : >> { %v897_v39 = vmul.f32 %v1908_v8, %v1908_v8  ;;  %v1916_v41 = vsel %vm851_vm0, %v1451_v7, %v875_v34  ;;  %v880_v42 = vsel %vm327_vm4, %v1908_v8, 0.0  ;;  %v883_v54 = vsel %vm327_vm4, %v1910_v27, 0.0 }
 0x6dc   : >> { %v1914_v40 = vsel %vm849_vm2, %v836_v3, %v873_v37  ;;  %v900_v55 = vmul.f32 %v1916_v41, %v1916_v41  ;;  %v885_v43 = vsel %vm327_vm4, %v1916_v41, 0.0  ;;  %v904_v31 = vsel %vm327_vm4, %v899_v51, 0.0 }
 0x6dd   : >> { %v881_v44 = vsel %vm327_vm4, %v1914_v40, 0.0  ;;  %v898_v45 = vmul.f32 %v1914_v40, %v1914_v40  ;;  %v901_v56 = vsel %vm327_vm4, %v897_v39, 0.0 }
 0x6de   : >> { %v882_v52 = vadd.f32 %v881_v44, %v880_v42  ;;  %v906_v59 = vsel %vm327_vm4, %v900_v55, 0.0 }
 0x6df   : >> { %v902_v53 = vsel %vm327_vm4, %v898_v45, 0.0 }
 0x6e0   : >> { %v884_v57 = vadd.f32 %v883_v54, %v882_v52  ;;  %v903_v38 = vadd.f32 %v902_v53, %v901_v56 }
 0x6e2   : >> { %v886_v49 = vadd.f32 %v885_v43, %v884_v57  ;;  %v905_v58 = vadd.f32 %v904_v31, %v903_v38 }
 0x6e4   : >> { %887 = vadd.xlane.f32.xlu1 %v886_v49  ;;  %v907_v60 = vadd.f32 %v906_v59, %v905_v58 }
 0x6e6   : >> { %908 = vadd.xlane.f32.xlu0 %v907_v60 }
 0x6f5   : >> { %930 = vperm.xlu1 %1554, %v1884_v16  }
 0x6f9   : >> { %934 = vperm.xlu1 %1554, %v1892_v18  }
 0x6fc   : >> { %926 = vperm.xlu0 %1553, %v1881_v15  }
 0x6fd   : >> { %938 = vperm.xlu1 %1554, %v1889_v17  }
 0x700   : >> { %1557 = vset.pattern.permute.xlu0 %v1619_v48 }
 0x701   : >> { %1555 = vset.pattern.permute.xlu1 %v1617_v46  ;;  %1059 = vperm.xlu0 %1557, %v1881_v15  }
 0x702   : >> { %955 = vperm.xlu1 %1555, %v1881_v15  }
 0x705   : >> { %1558 = vset.pattern.permute.xlu0 %v1618_v47 }
 0x706   : >> { %959 = vperm.xlu1 %1555, %v1884_v16  }
 0x70a   : >> { %963 = vperm.xlu1 %1555, %v1892_v18  }
 0x70e   : >> { %967 = vperm.xlu1 %1555, %v1889_v17  }
 0x712   : >> { %1556 = vset.pattern.permute.xlu1 %v1618_v47 }
 0x713   : >> { %1019 = vperm.xlu1 %1556, %v1881_v15  }
 0x717   : >> { %1027 = vperm.xlu1 %1556, %v1892_v18  }
 0x71b   : >> { %1559 = vset.pattern.permute.xlu1 %v1619_v48 }
 0x771   : >> { %v888_v46 = vpop.xlane.xlu1 %887 }
 0x772   : >> { %v889_v61 = vrot.slane %v888_v46, 4 }
 0x773   : >> { %v909_v62 = vpop.xlane.xlu0 %908 }
 0x774   : >> { %v890_v63 = vadd.f32 %v889_v61, %v888_v46  ;;  %v910_v0 = vrot.slane %v909_v62, 4 }
 0x775   : >> { %v931_v29 = vpop.permute.xlu1 %930 }
 0x776   : >> { %v891_v4 = vrot.slane %v890_v63, 2  ;;  %v911_v5 = vadd.f32 %v910_v0, %v909_v62 }
 0x778   : >> { %v912_v6 = vrot.slane %v911_v5, 2  ;;  %v892_v12 = vadd.f32 %v891_v4, %v890_v63 }
 0x779   : >> { %v935_v30 = vpop.permute.xlu1 %934 }
 0x77a   : >> { %v893_v13 = vrot.slane %v892_v12, 1  ;;  %v913_v14 = vadd.f32 %v912_v6, %v911_v5 }
 0x77b   : >> { %v927_v10 = vpop.permute.xlu0 %926 }
 0x77c   : >> { %v894_v19 = vadd.f32 %v893_v13, %v892_v12  ;;  %v914_v21 = vrot.slane %v913_v14, 1 }
 0x77d   : >> { %v939_v33 = vpop.permute.xlu1 %938 }
 0x77e   : >> { %1472 = vpush %v894_v19  ;;  %v915_v47 = vadd.f32 %v914_v21, %v913_v14 }
 0x780   : >> { %1474 = vpush %v915_v47  ;;  %v1060_v55 = vpop.permute.xlu0 %1059 }
 0x781   : >> { %v956_v23 = vpop.permute.xlu1 %955 }
 0x785   : >> { %v960_v3 = vpop.permute.xlu1 %959 }
 0x789   : >> { %v964_v44 = vpop.permute.xlu1 %963 }
 0x78d   : >> { %v968_v53 = vpop.permute.xlu1 %967 }
 0x792   : >> { %v1020_v54 = vpop.permute.xlu1 %1019 }
 0x796   : >> { %v1028_v56 = vpop.permute.xlu1 %1027 }
 0x7af   : >> { %s1473_s29 = spop %1472 }
 0x7b0   : >> { %s896_s6 = smul.f32 0.0020833334, %s1473_s29 }
 0x7b1   : >> { %s1475_s9 = spop %1474 }
 0x7b2   : >> { %s918_s10 = smul.f32 %s896_s6, %s896_s6  ;;  %v920_v32 = vstv %s896_s6 }
 0x7b3   : >> { %s917_s11 = smul.f32 0.0020833334, %s1475_s9  ;;  %v922_v11 = vsub.f32 %v1914_v40, %v920_v32  ;;  %v921_v28 = vsub.f32 %v1908_v8, %v920_v32  ;;  %v923_v42 = vsub.f32 %v1910_v27, %v920_v32  ;;  %v924_v8 = vsub.f32 %v1916_v41, %v920_v32 }
 0x7b5   : >> { %s919_s12 = ssub.f32 %s917_s11, %s918_s10  ;;  %v941_v1 = vmul.f32 %v927_v10, %v921_v28  ;;  %v942_v24 = vmul.f32 %v931_v29, %v922_v11  ;;  %v943_v40 = vmul.f32 %v935_v30, %v923_v42  ;;  %v944_v51 = vmul.f32 %v939_v33, %v924_v8 }
 0x7b7   : >> { %s945_s13 = sadd.f32 1e-08, %s919_s12 }
 0x7b9   : >> { %v946_v48 = vstv %s945_s13 }
 0x7ba   : >> { %1578 = vrsqrt.f32 %v946_v48 }
 0x7c4   : >> { %v1579_v22 = vpop.eup %1578 }
 0x7c5   : >> { %1476 = vpush %v1579_v22 }
 0x7f6   : >> { %s1477_s14 = spop %1476 }
 0x7f7   : >> { %v949_v2 = vstv %s1477_s14 }
 0x7f8   : >> { %v950_v7 = vmul.f32 %v949_v2, %v941_v1  ;;  %v951_v34 = vmul.f32 %v949_v2, %v942_v24  ;;  %v952_v45 = vmul.f32 %v949_v2, %v943_v40  ;;  %v953_v27 = vmul.f32 %v949_v2, %v944_v51 }
 0x7fa   : >> { %v970_v37 = vadd.f32 %v956_v23, %v950_v7  ;;  %v971_v39 = vadd.f32 %v960_v3, %v951_v34  ;;  %v972_v52 = vadd.f32 %v964_v44, %v952_v45  ;;  %v973_v41 = vadd.f32 %v968_v53, %v953_v27 }
 0x7fc   : >> { %978 = vrot.lane.b32.xlu1 %v970_v37, %s1620_s16  ;;  %980 = vrot.lane.b32.xlu0 %v971_v39, %s1620_s16 }
 0x800   : >> { %1063 = vperm.xlu1 %1559, %v1884_v16   ;;  %1023 = vperm.xlu0 %1558, %v1884_v16  }
 0x804   : >> { %1067 = vperm.xlu1 %1559, %v1892_v18   ;;  %1031 = vperm.xlu0 %1558, %v1889_v17  }
 0x808   : >> { %1560 = vset.pattern.permute.xlu0 %v1621_v35  ;;  %982 = vrot.lane.b32.xlu1 %v972_v52, %s1620_s16 }
 0x809   : >> { %999 = vperm.xlu0 %1560, %v1881_v15  }
 0x80c   : >> { %984 = vrot.lane.b32.xlu1 %v973_v41, %s1620_s16  ;;  %s1629_s16 = smov 124  }
 0x80d   : >> { %1011 = vperm.xlu0 %1560, %v1889_v17  }
 0x810   : >> { %1071 = vperm.xlu1 %1559, %v1889_v17  }
 0x811   : >> { %1563 = vset.pattern.permute.xlu0 %v1622_v36 }
 0x812   : >> { %1107 = vperm.xlu0 %1563, %v1884_v16  }
 0x814   : >> { %1561 = vset.pattern.permute.xlu1 %v1621_v35 }
 0x815   : >> { %1003 = vperm.xlu1 %1561, %v1884_v16  }
 0x816   : >> { %1564 = vset.pattern.permute.xlu0 %v1625_v50 }
 0x819   : >> { %1007 = vperm.xlu1 %1561, %v1892_v18  }
 0x81d   : >> { %1562 = vset.pattern.permute.xlu1 %v1622_v36 }
 0x81e   : >> { %1103 = vperm.xlu1 %1562, %v1881_v15  }
 0x822   : >> { %1111 = vperm.xlu1 %1562, %v1892_v18  }
 0x826   : >> { %1115 = vperm.xlu1 %1562, %v1889_v17  }
 0x82a   : >> { %1565 = vset.pattern.permute.xlu1 %v1625_v50 }
 0x86e   : >> { %v981_v35 = vpop.permute.xlu0 %980  ;;  %v979_v57 = vpop.permute.xlu1 %978 }
 0x86f   : >> { %991 = vst.msk [vmem:[#allocation2 + $0x8] sm:$0xff] %vm438_vm7, %v981_v35  ;;  %990 = vst.msk [vmem:[#allocation2] sm:$0xff] %vm438_vm7, %v979_v57 }
 0x876   : >> { %v994_v38 = vld [vmem:[#allocation2] sm:$0xff]  ;;  %v995_v31 = vld [vmem:[#allocation2 + $0x8] sm:$0xff] }
 0x877   : >> { %v1034_v43 = vmul.f32 %v1020_v54, %v994_v38  ;;  %v1074_v36 = vmul.f32 %v1060_v55, %v994_v38 }
 0x879   : >> { %1042 = vrot.lane.b32.xlu1 %v1034_v43, %s1624_s18 }
 0x87d   : >> { %1082 = vrot.lane.b32.xlu1 %v1074_v36, %s1629_s16 }
 0x87f   : >> { %v1024_v49 = vpop.permute.xlu0 %1023  ;;  %v1064_v58 = vpop.permute.xlu1 %1063 }
 0x880   : >> { %v1035_v50 = vmul.f32 %v1024_v49, %v995_v31  ;;  %v1075_v4 = vmul.f32 %v1064_v58, %v995_v31 }
 0x882   : >> { %1044 = vrot.lane.b32.xlu0 %v1035_v50, %s1624_s18 }
 0x883   : >> { %v1068_v59 = vpop.permute.xlu1 %1067  ;;  %v1032_v63 = vpop.permute.xlu0 %1031 }
 0x887   : >> { %v983_v60 = vpop.permute.xlu1 %982 }
 0x888   : >> { %992 = vst.msk [vmem:[#allocation2 + $0x10] sm:$0xff] %vm438_vm7, %v983_v60  ;;  %v1000_v48 = vpop.permute.xlu0 %999 }
 0x889   : >> { %v1014_v33 = vmul.f32 %v1000_v48, %v994_v38 }
 0x88b   : >> { %v985_v46 = vpop.permute.xlu1 %984 }
 0x88c   : >> { %993 = vst.msk [vmem:[#allocation2 + $0x18] sm:$0xff] %vm438_vm7, %v985_v46  ;;  %v1012_v29 = vpop.permute.xlu0 %1011 }
 0x88f   : >> { %v996_v61 = vld [vmem:[#allocation2 + $0x10] sm:$0xff]  ;;  %v1072_v6 = vpop.permute.xlu1 %1071 }
 0x890   : >> { %v1036_v62 = vmul.f32 %v1028_v56, %v996_v61  ;;  %v1076_v13 = vmul.f32 %v1068_v59, %v996_v61 }
 0x891   : >> { %v1108_v32 = vpop.permute.xlu0 %1107 }
 0x892   : >> { %1046 = vrot.lane.b32.xlu0 %v1036_v62, %s1624_s18 }
 0x893   : >> { %v997_v0 = vld [vmem:[#allocation2 + $0x18] sm:$0xff] }
 0x894   : >> { %v1037_v5 = vmul.f32 %v1032_v63, %v997_v0  ;;  %v1077_v12 = vmul.f32 %v1072_v6, %v997_v0  ;;  %v1004_v14 = vpop.permute.xlu1 %1003  ;;  %v1017_v37 = vmul.f32 %v1012_v29, %v997_v0 }
 0x895   : >> { %v1015_v24 = vmul.f32 %v1004_v14, %v995_v31 }
 0x896   : >> { %1084 = vrot.lane.b32.xlu0 %v1075_v4, %s1629_s16  ;;  %1048 = vrot.lane.b32.xlu1 %v1037_v5, %s1624_s18 }
 0x898   : >> { %v1008_v19 = vpop.permute.xlu1 %1007 }
 0x899   : >> { %v1016_v39 = vmul.f32 %v1008_v19, %v996_v61 }
 0x89a   : >> { %1086 = vrot.lane.b32.xlu0 %v1076_v13, %s1629_s16  ;;  %1088 = vrot.lane.b32.xlu1 %v1077_v12, %s1629_s16 }
 0x89d   : >> { %v1104_v21 = vpop.permute.xlu1 %1103 }
 0x8a1   : >> { %v1112_v47 = vpop.permute.xlu1 %1111 }
 0x8a5   : >> { %v1116_v22 = vpop.permute.xlu1 %1115 }
 0x8eb   : >> { %v1043_v30 = vpop.permute.xlu1 %1042 }
 0x8ec   : >> { %v1054_v28 = vadd.f32 %v1043_v30, %v1014_v33 }
 0x8ef   : >> { %v1083_v11 = vpop.permute.xlu1 %1082 }
 0x8f0   : >> { %v1094_v23 = vadd.f32 %v1083_v11, %v1054_v28 }
 0x8f2   : >> { %v1118_v2 = vmul.f32 %v1104_v21, %v1094_v23  ;;  %vm1098_vm1 = vcmp.ge.f32.partialorder %v1094_v23, 0.0 }
 0x8f4   : >> { %v1045_v10 = vpop.permute.xlu0 %1044  ;;  %v1987_v40 = vsel %vm1098_vm1, %v1094_v23, %v1118_v2 }
 0x8f5   : >> { %v1055_v7 = vadd.f32 %v1045_v10, %v1015_v24  ;;  %v1143_v54 = vmul.f32 %v1987_v40, %v1987_v40  ;;  %v1126_v38 = vsel %vm327_vm4, %v1987_v40, 0.0 }
 0x8f7   : >> { %v1147_v60 = vsel %vm327_vm4, %v1143_v54, 0.0 }
 0x904   : >> { %v1047_v1 = vpop.permute.xlu0 %1046 }
 0x905   : >> { %v1056_v8 = vadd.f32 %v1047_v1, %v1016_v39 }
 0x908   : >> { %v1085_v34 = vpop.permute.xlu0 %1084  ;;  %v1049_v3 = vpop.permute.xlu1 %1048 }
 0x909   : >> { %v1095_v42 = vadd.f32 %v1085_v34, %v1055_v7  ;;  %v1057_v45 = vadd.f32 %v1049_v3, %v1017_v37 }
 0x90b   : >> { %vm1099_vm3 = vcmp.ge.f32.partialorder %v1095_v42, 0.0  ;;  %v1119_v44 = vmul.f32 %v1108_v32, %v1095_v42 }
 0x90c   : >> { %v1087_v51 = vpop.permute.xlu0 %1086  ;;  %v1089_v52 = vpop.permute.xlu1 %1088 }
 0x90d   : >> { %v1989_v27 = vsel %vm1099_vm3, %v1095_v42, %v1119_v44  ;;  %v1096_v53 = vadd.f32 %v1087_v51, %v1056_v8  ;;  %v1097_v41 = vadd.f32 %v1089_v52, %v1057_v45 }
 0x90e   : >> { %v1144_v55 = vmul.f32 %v1989_v27, %v1989_v27  ;;  %v1127_v56 = vsel %vm327_vm4, %v1989_v27, 0.0 }
 0x90f   : >> { %vm1100_vm5 = vcmp.ge.f32.partialorder %v1096_v53, 0.0  ;;  %v1120_v35 = vmul.f32 %v1112_v47, %v1096_v53  ;;  %vm1101_vm6 = vcmp.ge.f32.partialorder %v1097_v41, 0.0  ;;  %v1121_v57 = vmul.f32 %v1116_v22, %v1097_v41 }
 0x910   : >> { %v1148_v43 = vsel %vm327_vm4, %v1144_v55, 0.0  ;;  %v1128_v49 = vadd.f32 %v1127_v56, %v1126_v38  ;;  %v1573_v38 = vld [vmem:[%s1866_s7 + $0x8] sm:$0xff]  }
 0x911   : >> { %v2000_v36 = vsel %vm1100_vm5, %v1096_v53, %v1120_v35  ;;  %v2002_v31 = vsel %vm1101_vm6, %v1097_v41, %v1121_v57  ;;  %v1149_v61 = vadd.f32 %v1148_v43, %v1147_v60 }
 0x912   : >> { %v1145_v58 = vmul.f32 %v2000_v36, %v2000_v36  ;;  %v1129_v50 = vsel %vm327_vm4, %v2000_v36, 0.0  ;;  %v1146_v59 = vmul.f32 %v2002_v31, %v2002_v31  ;;  %v1131_v62 = vsel %vm327_vm4, %v2002_v31, 0.0 }
 0x913   : >> { %v1130_v46 = vadd.f32 %v1129_v50, %v1128_v49 }
 0x914   : >> { %v1150_v63 = vsel %vm327_vm4, %v1145_v58, 0.0  ;;  %v1152_v5 = vsel %vm327_vm4, %v1146_v59, 0.0 }
 0x915   : >> { %v1132_v0 = vadd.f32 %v1131_v62, %v1130_v46  ;;  %v1151_v4 = vadd.f32 %v1150_v63, %v1149_v61 }
 0x917   : >> { %1133 = vadd.xlane.f32.xlu0 %v1132_v0  ;;  %v1153_v6 = vadd.f32 %v1152_v5, %v1151_v4 }
 0x919   : >> { %1154 = vadd.xlane.f32.xlu1 %v1153_v6 }
 0x92a   : >> { %1176 = vperm.xlu1 %1565, %v1884_v16  }
 0x92d   : >> { %1172 = vperm.xlu0 %1564, %v1881_v15  }
 0x92e   : >> { %1180 = vperm.xlu1 %1565, %v1892_v18  }
 0x931   : >> { %1567 = vset.pattern.permute.xlu0 %v1626_v20 }
 0x932   : >> { %1184 = vperm.xlu1 %1565, %v1889_v17   ;;  %1213 = vperm.xlu0 %1567, %v1889_v17  }
 0x936   : >> { %1566 = vset.pattern.permute.xlu1 %v1626_v20 }
 0x937   : >> { %1201 = vperm.xlu1 %1566, %v1881_v15  }
 0x93b   : >> { %1205 = vperm.xlu1 %1566, %v1884_v16  }
 0x93f   : >> { %1209 = vperm.xlu1 %1566, %v1892_v18  }
 0x9a4   : >> { %v1134_v12 = vpop.xlane.xlu0 %1133 }
 0x9a5   : >> { %v1135_v13 = vrot.slane %v1134_v12, 4 }
 0x9a6   : >> { %v1155_v14 = vpop.xlane.xlu1 %1154 }
 0x9a7   : >> { %v1136_v19 = vadd.f32 %v1135_v13, %v1134_v12  ;;  %v1156_v21 = vrot.slane %v1155_v14, 4 }
 0x9a9   : >> { %v1137_v47 = vrot.slane %v1136_v19, 2  ;;  %v1157_v48 = vadd.f32 %v1156_v21, %v1155_v14 }
 0x9aa   : >> { %v1177_v18 = vpop.permute.xlu1 %1176 }
 0x9ab   : >> { %v1158_v22 = vrot.slane %v1157_v48, 2  ;;  %v1138_v29 = vadd.f32 %v1137_v47, %v1136_v19 }
 0x9ac   : >> { %v1173_v34 = vpop.permute.xlu0 %1172 }
 0x9ad   : >> { %v1139_v30 = vrot.slane %v1138_v29, 1  ;;  %v1159_v32 = vadd.f32 %v1158_v22, %v1157_v48 }
 0x9ae   : >> { %v1181_v11 = vpop.permute.xlu1 %1180 }
 0x9af   : >> { %v1140_v17 = vadd.f32 %v1139_v30, %v1138_v29  ;;  %v1160_v33 = vrot.slane %v1159_v32, 1 }
 0x9b1   : >> { %1478 = vpush %v1140_v17  ;;  %v1161_v20 = vadd.f32 %v1160_v33, %v1159_v32 }
 0x9b2   : >> { %v1185_v28 = vpop.permute.xlu1 %1184 }
 0x9b3   : >> { %1480 = vpush %v1161_v20 }
 0x9b6   : >> { %v1202_v23 = vpop.permute.xlu1 %1201 }
 0x9ba   : >> { %v1206_v3 = vpop.permute.xlu1 %1205 }
 0x9be   : >> { %v1210_v55 = vpop.permute.xlu1 %1209 }
 0x9e2   : >> { %s1479_s17 = spop %1478 }
 0x9e3   : >> { %s1142_s18 = smul.f32 0.0020833334, %s1479_s17 }
 0x9e4   : >> { %s1481_s19 = spop %1480 }
 0x9e5   : >> { %s1164_s20 = smul.f32 %s1142_s18, %s1142_s18  ;;  %v1166_v10 = vstv %s1142_s18 }
 0x9e6   : >> { %s1163_s21 = smul.f32 0.0020833334, %s1481_s19  ;;  %v1168_v1 = vsub.f32 %v1989_v27, %v1166_v10  ;;  %v1169_v24 = vsub.f32 %v2000_v36, %v1166_v10  ;;  %v1170_v2 = vsub.f32 %v2002_v31, %v1166_v10  ;;  %v1167_v7 = vsub.f32 %v1987_v40, %v1166_v10  ;;  %v1214_v27 = vpop.permute.xlu0 %1213 }
 0x9e8   : >> { %s1165_s22 = ssub.f32 %s1163_s21, %s1164_s20  ;;  %v1189_v37 = vmul.f32 %v1181_v11, %v1169_v24  ;;  %v1190_v39 = vmul.f32 %v1185_v28, %v1170_v2  ;;  %v1187_v42 = vmul.f32 %v1173_v34, %v1167_v7  ;;  %v1188_v8 = vmul.f32 %v1177_v18, %v1168_v1 }
 0x9ea   : >> { %s1191_s25 = sadd.f32 1e-08, %s1165_s22 }
 0x9ec   : >> { %v1192_v15 = vstv %s1191_s25 }
 0x9ed   : >> { %1580 = vrsqrt.f32 %v1192_v15 }
 0x9f7   : >> { %v1581_v16 = vpop.eup %1580 }
 0x9f8   : >> { %1482 = vpush %v1581_v16 }
 0xa29   : >> { %s1483_s26 = spop %1482 }
 0xa2a   : >> { %v1195_v44 = vstv %s1483_s26 }
 0xa2b   : >> { %v1196_v45 = vmul.f32 %v1195_v44, %v1187_v42  ;;  %v1197_v51 = vmul.f32 %v1195_v44, %v1188_v8  ;;  %v1198_v52 = vmul.f32 %v1195_v44, %v1189_v37  ;;  %v1199_v53 = vmul.f32 %v1195_v44, %v1190_v39 }
 0xa2d   : >> { %v1216_v41 = vadd.f32 %v1202_v23, %v1196_v45  ;;  %v1217_v54 = vadd.f32 %v1206_v3, %v1197_v51  ;;  %v1218_v56 = vadd.f32 %v1210_v55, %v1198_v52  ;;  %v1219_v35 = vadd.f32 %v1214_v27, %v1199_v53 }
 0xa2f   : >> { %v1225_v40 = vpack.c.bf16 %v1217_v54, %v1216_v41  ;;  %v1226_v57 = vpack.c.bf16 %v1219_v35, %v1218_v56 }
 0xa31   : >> { %1453 = vmatpush3.bf16.msra.mxu1 %v1225_v40 }
 0xa32   : >> { %1454 = vmatprep.subr.bf16.mxu1 %v1627_v9 }
 0xa35   : >> { %1455 = vmatpush3.bf16.msra.mxu1 %v1226_v57 }
 0xa38   : >> { %1457 = vmatmul.mubr.msk.bf16.vlgmr.msra.gmra.mrb[4].mxu1 %vm721_vm13, %v1573_v38 }
 0xb0a   : > { %210 = sbr.rel (!%p208_p4) target bundleno = 17 (0x11), region = 79 }
 0xb0b   : >> { %v1269_v43 = vpop.f32.mrb[4].mxu1 }
 0xb0c   : >> { %v1276_v36 = vadd.f32 %v1269_v43, %v1899_v25   ;;  %v1458_v31 = vpop.f32.mrb[5].mxu1 }
 0xb0d   : >> { %v1272_v49 = vpop.f32.mrb[6].mxu1 }
 0xb0e   : >> { %v1277_v58 = vadd.f32 %v1272_v49, %v1902_v26   ;;  %v1459_v50 = vpop.f32.mrb[7].mxu1  ;;  %v2054_v1 = vmov %v1276_v36  ;;  %1279 = vst.msk [vmem:[%s1669_s23] sm:$0xff] (%p208_p4), %vm327_vm4, %v1276_v36 }
 0xb10   : >> { %v2053_v2 = vmov %v1277_v58  ;;  %1280 = vst.msk [vmem:[%s1669_s23 + $0x8] sm:$0xff] (%p208_p4), %vm327_vm4, %v1277_v58 }
 0xb11 PF: > { %s14_s15 = sadd.s32 1, %s1600_s15  }
 0xb12   : > { %p11_p5 = scmp.ge.s32.totalorder %s14_s15, 4  }
 0xb14   :  { %13 = sbr.rel (!%p11_p5) target bundleno = 1 (0x1), region = 90 }

</bundles_post_ra>
